<compile_context>
chip_gen: v5e
topology: v5e:2x2
jax: 0.10.0
libtpu: 0.0.40
codegen_flags: <defaults>
</compile_context>

<pallas_src>
import math

import jax
import jax.numpy as jnp
from jax.experimental import pallas as pl
from jax.experimental.pallas import tpu as pltpu

_K = 3  # every Conv1d in the module has kernel_size 3


def _round_up(n, m):
    return ((n + m - 1) // m) * m


def _activation(y, act):
    if act == "relu":
        return jnp.maximum(y, 0.0)
    if act == "sigmoid":
        return jax.nn.sigmoid(y)
    return y


def _conv_block(a, w_ref, b_ref, *, padding, pool, act):
    """Conv1d(k=3, stride=1, padding) [+ MaxPool1d(2,2)] + bias + activation, batched.

    a:     list of L_in arrays, each (Cin, TB): channels on sublanes, batch on lanes.
    w_ref: (K, Cout, Cin) ref; W_t = w_ref[t].
    b_ref: (Cout, 1) ref; broadcasts over the batch lanes.
    Returns a list of L_out (pooled) arrays, each (Cout, TB).
    """
    l_in = len(a)
    cin = a[0].shape[0]
    l_out = l_in + 2 * padding - (_K - 1)
    bias = b_ref[...]                                  # (Cout, 1)

    def conv_at(p):
        acc = None
        for t in range(_K):
            idx = p + t - padding
            if not 0 <= idx < l_in:
                continue                               # zero-padding tap: no contribution
            w_t = w_ref[t]                             # (Cout, Cin)
            x_t = a[idx]                               # (Cin, TB)
            if cin == 1:
                contrib = w_t * x_t                    # (Cout,1)*(1,TB): VPU outer product
            else:
                contrib = jnp.dot(w_t, x_t, preferred_element_type=jnp.float32)  # MXU
            acc = contrib if acc is None else acc + contrib
        return acc

    ys = [conv_at(p) for p in range(l_out)]
    if pool:
        # floor(l_out/2) pooled positions: matches PyTorch MaxPool1d(2, 2)
        ys = [jnp.maximum(ys[2 * i], ys[2 * i + 1]) for i in range(l_out // 2)]
    return [_activation(y + bias, act) for y in ys]


def _fused_kernel(
    x_ref, m_ref,
    c1w, c1b, c2w, c2b, c3w, c3b,
    e1w, e1b, e2w, e2b, e3w, e3b,
    mfw, mfb, fxw, fmw, fcb,
    o_ref,
):
    # ---- main branch: (window, TB) -> (32, TB) ----
    xv = x_ref[...]
    a = [xv[p:p + 1, :] for p in range(xv.shape[0])]                     # window x (1, TB)
    a = _conv_block(a, c1w, c1b, padding=2, pool=True, act="relu")       # 5 x (8, TB)
    a = _conv_block(a, c2w, c2b, padding=1, pool=True, act="relu")       # 2 x (16, TB)
    a = _conv_block(a, c3w, c3b, padding=1, pool=True, act="sigmoid")    # 1 x (32, TB)
    x4 = a[0]   # == x3.view(B,-1): pooled length is 1, so the flat vector is the channels

    # ---- metrics encoder: (Lm, TB) -> (32, TB) ----
    # (the two permutes in the PyTorch code cancel; metrics enters conv1 as-is)
    # TODO(synk): nn.Dropout(0.2/0.5) layers are eval-mode identity (inference semantics).
    mv = m_ref[...]
    m = [mv[p:p + 1, :] for p in range(mv.shape[0])]                     # Lm x (1, TB)
    m = _conv_block(m, e1w, e1b, padding=1, pool=True, act="relu")       # 2 x (16, TB)
    m = _conv_block(m, e2w, e2b, padding=1, pool=True, act="relu")       # 1 x (32, TB)
    m = _conv_block(m, e3w, e3b, padding=1, pool=False, act="sigmoid")   # 1 x (64, TB)
    m5 = jnp.dot(mfw[...], m[0], preferred_element_type=jnp.float32) + mfb[...]  # (32, TB)

    # ---- head: fc(concat(x4, m5)) as two partial matmuls (concat fused away) ----
    out = (jnp.dot(fxw[...], x4, preferred_element_type=jnp.float32)
           + jnp.dot(fmw[...], m5, preferred_element_type=jnp.float32)
           + fcb[...])                                                   # (n_out, TB)
    o_ref[...] = out.astype(o_ref.dtype)                                 # lane-dense store


def encoder_decoder_forward(kparams, x, metrics, *, batch_tile=512):
    """x: (B, 1, window) NCL; metrics: (B, 1, Lm) NCL.  Returns (B, window)."""
    b, _, window = x.shape
    lm = metrics.shape[2]
    n_out = kparams["fc_b"].shape[0]

    # Static checks for the flatten/concat fusion (see review's correctness note).
    assert window >= 6, "kernel implements the window_size >= 6 (pooling) branches"
    l1 = (window + 2 * 2 - (_K - 1)) // 2
    l2 = (l1 + 2 * 1 - (_K - 1)) // 2
    l3 = (l2 + 2 * 1 - (_K - 1)) // 2
    assert l3 == 1, "x3.view(B,-1) fusion assumes pooled length 1 after main conv3"
    me1 = (lm + 2 * 1 - (_K - 1)) // 2
    me2 = (me1 + 2 * 1 - (_K - 1)) // 2
    assert me2 == 1, "metrics fc1(64->32) assumes pooled length 1 after metrics conv2"

    # Batch tile: multiple of 128 to fill the lane axis; capped so the grid keeps >= 2
    # steps once B > 128 (keeps both v7x TensorCores busy via the parallel grid axis).
    tb = max(128, min(batch_tile, _round_up(-(-b // 2), 128)))
    b_pad = _round_up(b, tb)

    # NCL -> (length, batch): positions on sublanes, batch on the 128-lane axis.
    # TODO(synk): on v6e/v7x the x/metrics/output streams could be bf16 for ~2x HBM
    # headroom; kept f32 so elementwise (bias/relu/sigmoid/max) stays native on v5e too.
    x_lb = jnp.transpose(x[:, 0, :], (1, 0)).astype(jnp.float32)         # (window, B)
    m_lb = jnp.transpose(metrics[:, 0, :], (1, 0)).astype(jnp.float32)   # (Lm, B)
    if b_pad != b:
        x_lb = jnp.pad(x_lb, ((0, 0), (0, b_pad - b)))
        m_lb = jnp.pad(m_lb, ((0, 0), (0, b_pad - b)))

    weights = [
        kparams["c1_w"], kparams["c1_b"], kparams["c2_w"], kparams["c2_b"],
        kparams["c3_w"], kparams["c3_b"],
        kparams["m1_w"], kparams["m1_b"], kparams["m2_w"], kparams["m2_b"],
        kparams["m3_w"], kparams["m3_b"],
        kparams["mfc_w"], kparams["mfc_b"],
        kparams["fcx_w"], kparams["fcm_w"], kparams["fc_b"],
    ]

    def resident_spec(arr):
        # Constant block index -> fetched once, stays VMEM-resident across the grid
        # (all weights together are < 20 KB, so double-buffer overhead is negligible).
        nd = arr.ndim
        return pl.BlockSpec(arr.shape, lambda i, _nd=nd: (0,) * _nd)

    in_specs = (
        [pl.BlockSpec((window, tb), lambda i: (0, i)),
         pl.BlockSpec((lm, tb), lambda i: (0, i))]
        + [resident_spec(w) for w in weights]
    )

    out = pl.pallas_call(
        _fused_kernel,
        out_shape=jax.ShapeDtypeStruct((n_out, b_pad), jnp.float32),
        grid=(b_pad // tb,),
        in_specs=in_specs,
        out_specs=pl.BlockSpec((n_out, tb), lambda i: (0, i)),
        compiler_params=pltpu.CompilerParams(
            dimension_semantics=("parallel",)),   # batch tiles shard across TCs on v7x
    )(x_lb, m_lb, *weights)

    return jnp.transpose(out[:, :b], (1, 0))      # (B, n_out)


# ---------------------------------------------------------------------------
# Parameters: PyTorch-like init + one-time relayout into kernel (matmul) layout
# ---------------------------------------------------------------------------
def _conv_params(key, cout, cin, k):
    k1, k2 = jax.random.split(key)
    bound = 1.0 / math.sqrt(cin * k)
    w = jax.random.uniform(k1, (cout, cin, k), jnp.float32, -bound, bound)
    b = jax.random.uniform(k2, (cout,), jnp.float32, -bound, bound)
    return w, b


def _linear_params(key, dout, din):
    k1, k2 = jax.random.split(key)
    bound = 1.0 / math.sqrt(din)
    w = jax.random.uniform(k1, (dout, din), jnp.float32, -bound, bound)
    b = jax.random.uniform(k2, (dout,), jnp.float32, -bound, bound)
    return w, b


def init_params(key, window_size=8):
    keys = jax.random.split(key, 8)
    p = {}
    p["c1_w"], p["c1_b"] = _conv_params(keys[0], 8, 1, 3)
    p["c2_w"], p["c2_b"] = _conv_params(keys[1], 16, 8, 3)
    p["c3_w"], p["c3_b"] = _conv_params(keys[2], 32, 16, 3)
    p["m1_w"], p["m1_b"] = _conv_params(keys[3], 16, 1, 3)
    p["m2_w"], p["m2_b"] = _conv_params(keys[4], 32, 16, 3)
    p["m3_w"], p["m3_b"] = _conv_params(keys[5], 64, 32, 3)
    p["mfc_w"], p["mfc_b"] = _linear_params(keys[6], 32, 64)
    p["fc_w"], p["fc_b"] = _linear_params(keys[7], window_size, 64)
    return p


def prepare_params(p):
    """One-time relayout (done OUTSIDE the jitted forward) for the batch-on-lanes kernel:
       conv (Cout,Cin,K) -> (K,Cout,Cin) so W_t left-multiplies a (Cin,TB) tile;
       linears stay (Dout,Din); biases become columns (D,1); the fc over concat(x4, m5)
       is split into the x4 half and the metrics half."""
    def conv_w(w):
        return jnp.transpose(w, (2, 0, 1))

    kp = {}
    for name in ("c1", "c2", "c3", "m1", "m2", "m3"):
        kp[name + "_w"] = conv_w(p[name + "_w"])
        kp[name + "_b"] = p[name + "_b"].reshape(-1, 1)
    kp["mfc_w"] = p["mfc_w"]                    # (32, 64)
    kp["mfc_b"] = p["mfc_b"].reshape(-1, 1)
    kp["fcx_w"] = p["fc_w"][:, :32]             # (n_out, 32): acts on x4
    kp["fcm_w"] = p["fc_w"][:, 32:]             # (n_out, 32): acts on the metrics encoding
    kp["fc_b"] = p["fc_b"].reshape(-1, 1)
    return kp


# ---------------------------------------------------------------------------
# Pure-JAX reference of the PyTorch module (for a correctness sanity check)
# ---------------------------------------------------------------------------
def reference_forward(p, x, metrics):
    def conv1d(a, w, b, padding):
        out = jax.lax.conv_general_dilated(
            a, w, window_strides=(1,), padding=[(padding, padding)],
            dimension_numbers=("NCH", "OIH", "NCH"))
        return out + b[None, :, None]

    def maxpool2(a):
        lp = a.shape[2] // 2
        a = a[:, :, :2 * lp]
        return jnp.max(a.reshape(a.shape[0], a.shape[1], lp, 2), axis=-1)

    relu = lambda v: jnp.maximum(v, 0.0)
    sig = jax.nn.sigmoid

    a = relu(maxpool2(conv1d(x, p["c1_w"], p["c1_b"], 2)))
    a = relu(maxpool2(conv1d(a, p["c2_w"], p["c2_b"], 1)))
    a = sig(maxpool2(conv1d(a, p["c3_w"], p["c3_b"], 1)))
    x4 = a.reshape(a.shape[0], -1)

    m = metrics  # the two permutes in the PyTorch code cancel
    m = relu(maxpool2(conv1d(m, p["m1_w"], p["m1_b"], 1)))
    m = relu(maxpool2(conv1d(m, p["m2_w"], p["m2_b"], 1)))
    m = sig(conv1d(m, p["m3_w"], p["m3_b"], 1))
    m = m.reshape(m.shape[0], -1)
    m = m @ p["mfc_w"].T + p["mfc_b"]

    cat = jnp.concatenate([x4, m], axis=1)
    return cat @ p["fc_w"].T + p["fc_b"]


if __name__ == "__main__":
    key = jax.random.PRNGKey(0)
    kp_key, kx, km, kx2, km2 = jax.random.split(key, 5)

    window_size = 8
    params = init_params(kp_key, window_size)
    kparams = prepare_params(params)   # one-time weight relayout

    fwd = jax.jit(encoder_decoder_forward)
    ref_fwd = jax.jit(reference_forward)

    # Small shapes per the module: x (B=2, C=1, window=8); metrics (B=2, C=1, 4)  (NCL)
    x = jax.random.normal(kx, (2, 1, window_size), jnp.float32)
    metrics = jax.random.normal(km, (2, 1, 4), jnp.float32)
    out = jax.block_until_ready(fwd(kparams, x, metrics))
    ref = ref_fwd(params, x, metrics)
    assert out.shape == (2, window_size), out.shape
    assert out.dtype == jnp.float32
    assert bool(jnp.all(jnp.isfinite(out)))
    assert bool(jnp.allclose(out, ref, rtol=5e-2, atol=5e-2)), \
        float(jnp.max(jnp.abs(out - ref)))

    # Larger batch exercises the multi-step grid (>=2 tiles) and the batch-padding path.
    xb = jax.random.normal(kx2, (300, 1, window_size), jnp.float32)
    mb = jax.random.normal(km2, (300, 1, 4), jnp.float32)
    outb = jax.block_until_ready(fwd(kparams, xb, mb))
    refb = ref_fwd(params, xb, mb)
    assert outb.shape == (300, window_size)
    assert bool(jnp.all(jnp.isfinite(outb)))
    assert bool(jnp.allclose(outb, refb, rtol=5e-2, atol=5e-2)), \
        float(jnp.max(jnp.abs(outb - refb)))

    print("KERNEL_OK")
</pallas_src>

<mosaic_0001>
module attributes {stable_mosaic.version = 11 : i64} {
  func.func @_fused_kernel(%arg0: i32, %arg1: memref<8x128xf32, #tpu.memory_space<vmem>>, %arg2: memref<4x128xf32, #tpu.memory_space<vmem>>, %arg3: memref<3x8x1xf32, #tpu.memory_space<vmem>>, %arg4: memref<8x1xf32, #tpu.memory_space<vmem>>, %arg5: memref<3x16x8xf32, #tpu.memory_space<vmem>>, %arg6: memref<16x1xf32, #tpu.memory_space<vmem>>, %arg7: memref<3x32x16xf32, #tpu.memory_space<vmem>>, %arg8: memref<32x1xf32, #tpu.memory_space<vmem>>, %arg9: memref<3x16x1xf32, #tpu.memory_space<vmem>>, %arg10: memref<16x1xf32, #tpu.memory_space<vmem>>, %arg11: memref<3x32x16xf32, #tpu.memory_space<vmem>>, %arg12: memref<32x1xf32, #tpu.memory_space<vmem>>, %arg13: memref<3x64x32xf32, #tpu.memory_space<vmem>>, %arg14: memref<64x1xf32, #tpu.memory_space<vmem>>, %arg15: memref<32x64xf32, #tpu.memory_space<vmem>>, %arg16: memref<32x1xf32, #tpu.memory_space<vmem>>, %arg17: memref<8x32xf32, #tpu.memory_space<vmem>>, %arg18: memref<8x32xf32, #tpu.memory_space<vmem>>, %arg19: memref<8x1xf32, #tpu.memory_space<vmem>>, %arg20: memref<8x128xf32, #tpu.memory_space<vmem>>) attributes {dimension_semantics = [#tpu.dimension_semantics<parallel>], iteration_bounds = array<i64: 1>, scalar_prefetch = 0 : i64, scratch_operands = 0 : i64, tpu.core_type = #tpu.core_type<tc>, window_params = [{transform_indices = @transform_0, window_bounds = array<i64: 8, 128>}, {transform_indices = @transform_1, window_bounds = array<i64: 4, 128>}, {pipeline_mode = #tpu.pipeline_mode<synchronous>, transform_indices = @transform_2, window_bounds = array<i64: 3, 8, 1>}, {pipeline_mode = #tpu.pipeline_mode<synchronous>, transform_indices = @transform_3, window_bounds = array<i64: 8, 1>}, {pipeline_mode = #tpu.pipeline_mode<synchronous>, transform_indices = @transform_4, window_bounds = array<i64: 3, 16, 8>}, {pipeline_mode = #tpu.pipeline_mode<synchronous>, transform_indices = @transform_5, window_bounds = array<i64: 16, 1>}, {pipeline_mode = #tpu.pipeline_mode<synchronous>, transform_indices = @transform_6, window_bounds = array<i64: 3, 32, 16>}, {pipeline_mode = #tpu.pipeline_mode<synchronous>, transform_indices = @transform_7, window_bounds = array<i64: 32, 1>}, {pipeline_mode = #tpu.pipeline_mode<synchronous>, transform_indices = @transform_8, window_bounds = array<i64: 3, 16, 1>}, {pipeline_mode = #tpu.pipeline_mode<synchronous>, transform_indices = @transform_9, window_bounds = array<i64: 16, 1>}, {pipeline_mode = #tpu.pipeline_mode<synchronous>, transform_indices = @transform_10, window_bounds = array<i64: 3, 32, 16>}, {pipeline_mode = #tpu.pipeline_mode<synchronous>, transform_indices = @transform_11, window_bounds = array<i64: 32, 1>}, {pipeline_mode = #tpu.pipeline_mode<synchronous>, transform_indices = @transform_12, window_bounds = array<i64: 3, 64, 32>}, {pipeline_mode = #tpu.pipeline_mode<synchronous>, transform_indices = @transform_13, window_bounds = array<i64: 64, 1>}, {pipeline_mode = #tpu.pipeline_mode<synchronous>, transform_indices = @transform_14, window_bounds = array<i64: 32, 64>}, {pipeline_mode = #tpu.pipeline_mode<synchronous>, transform_indices = @transform_15, window_bounds = array<i64: 32, 1>}, {pipeline_mode = #tpu.pipeline_mode<synchronous>, transform_indices = @transform_16, window_bounds = array<i64: 8, 32>}, {pipeline_mode = #tpu.pipeline_mode<synchronous>, transform_indices = @transform_17, window_bounds = array<i64: 8, 32>}, {pipeline_mode = #tpu.pipeline_mode<synchronous>, transform_indices = @transform_18, window_bounds = array<i64: 8, 1>}, {transform_indices = @transform_19, window_bounds = array<i64: 8, 128>}]} {
    %c0 = arith.constant 0 : index
    %c0_0 = arith.constant 0 : index
    %0 = vector.load %arg1[%c0, %c0_0] : memref<8x128xf32, #tpu.memory_space<vmem>>, vector<8x128xf32>
    %1 = vector.extract_strided_slice %0 {offsets = [0, 0], sizes = [1, 128], strides = [1, 1]} : vector<8x128xf32> to vector<1x128xf32>
    %2 = vector.extract_strided_slice %0 {offsets = [1, 0], sizes = [1, 128], strides = [1, 1]} : vector<8x128xf32> to vector<1x128xf32>
    %3 = vector.extract_strided_slice %0 {offsets = [2, 0], sizes = [1, 128], strides = [1, 1]} : vector<8x128xf32> to vector<1x128xf32>
    %4 = vector.extract_strided_slice %0 {offsets = [3, 0], sizes = [1, 128], strides = [1, 1]} : vector<8x128xf32> to vector<1x128xf32>
    %5 = vector.extract_strided_slice %0 {offsets = [4, 0], sizes = [1, 128], strides = [1, 1]} : vector<8x128xf32> to vector<1x128xf32>
    %6 = vector.extract_strided_slice %0 {offsets = [5, 0], sizes = [1, 128], strides = [1, 1]} : vector<8x128xf32> to vector<1x128xf32>
    %7 = vector.extract_strided_slice %0 {offsets = [6, 0], sizes = [1, 128], strides = [1, 1]} : vector<8x128xf32> to vector<1x128xf32>
    %8 = vector.extract_strided_slice %0 {offsets = [7, 0], sizes = [1, 128], strides = [1, 1]} : vector<8x128xf32> to vector<1x128xf32>
    %c0_1 = arith.constant 0 : index
    %c0_2 = arith.constant 0 : index
    %9 = vector.load %arg4[%c0_1, %c0_2] : memref<8x1xf32, #tpu.memory_space<vmem>>, vector<8x1xf32>
    %c2 = arith.constant 2 : index
    %c0_3 = arith.constant 0 : index
    %c0_4 = arith.constant 0 : index
    %10 = vector.load %arg3[%c2, %c0_3, %c0_4] : memref<3x8x1xf32, #tpu.memory_space<vmem>>, vector<1x8x1xf32>
    %11 = vector.shape_cast %10 : vector<1x8x1xf32> to vector<8x1xf32>
    %12 = vector.broadcast %11 : vector<8x1xf32> to vector<8x128xf32>
    %13 = vector.broadcast %1 : vector<1x128xf32> to vector<8x128xf32>
    %14 = arith.mulf %12, %13 : vector<8x128xf32>
    %c1 = arith.constant 1 : index
    %c0_5 = arith.constant 0 : index
    %c0_6 = arith.constant 0 : index
    %15 = vector.load %arg3[%c1, %c0_5, %c0_6] : memref<3x8x1xf32, #tpu.memory_space<vmem>>, vector<1x8x1xf32>
    %16 = vector.shape_cast %15 : vector<1x8x1xf32> to vector<8x1xf32>
    %17 = vector.broadcast %16 : vector<8x1xf32> to vector<8x128xf32>
    %18 = vector.broadcast %1 : vector<1x128xf32> to vector<8x128xf32>
    %19 = arith.mulf %17, %18 : vector<8x128xf32>
    %c2_7 = arith.constant 2 : index
    %c0_8 = arith.constant 0 : index
    %c0_9 = arith.constant 0 : index
    %20 = vector.load %arg3[%c2_7, %c0_8, %c0_9] : memref<3x8x1xf32, #tpu.memory_space<vmem>>, vector<1x8x1xf32>
    %21 = vector.shape_cast %20 : vector<1x8x1xf32> to vector<8x1xf32>
    %22 = vector.broadcast %21 : vector<8x1xf32> to vector<8x128xf32>
    %23 = vector.broadcast %2 : vector<1x128xf32> to vector<8x128xf32>
    %24 = arith.mulf %22, %23 : vector<8x128xf32>
    %25 = arith.addf %19, %24 : vector<8x128xf32>
    %c0_10 = arith.constant 0 : index
    %c0_11 = arith.constant 0 : index
    %c0_12 = arith.constant 0 : index
    %26 = vector.load %arg3[%c0_10, %c0_11, %c0_12] : memref<3x8x1xf32, #tpu.memory_space<vmem>>, vector<1x8x1xf32>
    %27 = vector.shape_cast %26 : vector<1x8x1xf32> to vector<8x1xf32>
    %28 = vector.broadcast %27 : vector<8x1xf32> to vector<8x128xf32>
    %29 = vector.broadcast %1 : vector<1x128xf32> to vector<8x128xf32>
    %30 = arith.mulf %28, %29 : vector<8x128xf32>
    %c1_13 = arith.constant 1 : index
    %c0_14 = arith.constant 0 : index
    %c0_15 = arith.constant 0 : index
    %31 = vector.load %arg3[%c1_13, %c0_14, %c0_15] : memref<3x8x1xf32, #tpu.memory_space<vmem>>, vector<1x8x1xf32>
    %32 = vector.shape_cast %31 : vector<1x8x1xf32> to vector<8x1xf32>
    %33 = vector.broadcast %32 : vector<8x1xf32> to vector<8x128xf32>
    %34 = vector.broadcast %2 : vector<1x128xf32> to vector<8x128xf32>
    %35 = arith.mulf %33, %34 : vector<8x128xf32>
    %36 = arith.addf %30, %35 : vector<8x128xf32>
    %c2_16 = arith.constant 2 : index
    %c0_17 = arith.constant 0 : index
    %c0_18 = arith.constant 0 : index
    %37 = vector.load %arg3[%c2_16, %c0_17, %c0_18] : memref<3x8x1xf32, #tpu.memory_space<vmem>>, vector<1x8x1xf32>
    %38 = vector.shape_cast %37 : vector<1x8x1xf32> to vector<8x1xf32>
    %39 = vector.broadcast %38 : vector<8x1xf32> to vector<8x128xf32>
    %40 = vector.broadcast %3 : vector<1x128xf32> to vector<8x128xf32>
    %41 = arith.mulf %39, %40 : vector<8x128xf32>
    %42 = arith.addf %36, %41 : vector<8x128xf32>
    %c0_19 = arith.constant 0 : index
    %c0_20 = arith.constant 0 : index
    %c0_21 = arith.constant 0 : index
    %43 = vector.load %arg3[%c0_19, %c0_20, %c0_21] : memref<3x8x1xf32, #tpu.memory_space<vmem>>, vector<1x8x1xf32>
    %44 = vector.shape_cast %43 : vector<1x8x1xf32> to vector<8x1xf32>
    %45 = vector.broadcast %44 : vector<8x1xf32> to vector<8x128xf32>
    %46 = vector.broadcast %2 : vector<1x128xf32> to vector<8x128xf32>
    %47 = arith.mulf %45, %46 : vector<8x128xf32>
    %c1_22 = arith.constant 1 : index
    %c0_23 = arith.constant 0 : index
    %c0_24 = arith.constant 0 : index
    %48 = vector.load %arg3[%c1_22, %c0_23, %c0_24] : memref<3x8x1xf32, #tpu.memory_space<vmem>>, vector<1x8x1xf32>
    %49 = vector.shape_cast %48 : vector<1x8x1xf32> to vector<8x1xf32>
    %50 = vector.broadcast %49 : vector<8x1xf32> to vector<8x128xf32>
    %51 = vector.broadcast %3 : vector<1x128xf32> to vector<8x128xf32>
    %52 = arith.mulf %50, %51 : vector<8x128xf32>
    %53 = arith.addf %47, %52 : vector<8x128xf32>
    %c2_25 = arith.constant 2 : index
    %c0_26 = arith.constant 0 : index
    %c0_27 = arith.constant 0 : index
    %54 = vector.load %arg3[%c2_25, %c0_26, %c0_27] : memref<3x8x1xf32, #tpu.memory_space<vmem>>, vector<1x8x1xf32>
    %55 = vector.shape_cast %54 : vector<1x8x1xf32> to vector<8x1xf32>
    %56 = vector.broadcast %55 : vector<8x1xf32> to vector<8x128xf32>
    %57 = vector.broadcast %4 : vector<1x128xf32> to vector<8x128xf32>
    %58 = arith.mulf %56, %57 : vector<8x128xf32>
    %59 = arith.addf %53, %58 : vector<8x128xf32>
    %c0_28 = arith.constant 0 : index
    %c0_29 = arith.constant 0 : index
    %c0_30 = arith.constant 0 : index
    %60 = vector.load %arg3[%c0_28, %c0_29, %c0_30] : memref<3x8x1xf32, #tpu.memory_space<vmem>>, vector<1x8x1xf32>
    %61 = vector.shape_cast %60 : vector<1x8x1xf32> to vector<8x1xf32>
    %62 = vector.broadcast %61 : vector<8x1xf32> to vector<8x128xf32>
    %63 = vector.broadcast %3 : vector<1x128xf32> to vector<8x128xf32>
    %64 = arith.mulf %62, %63 : vector<8x128xf32>
    %c1_31 = arith.constant 1 : index
    %c0_32 = arith.constant 0 : index
    %c0_33 = arith.constant 0 : index
    %65 = vector.load %arg3[%c1_31, %c0_32, %c0_33] : memref<3x8x1xf32, #tpu.memory_space<vmem>>, vector<1x8x1xf32>
    %66 = vector.shape_cast %65 : vector<1x8x1xf32> to vector<8x1xf32>
    %67 = vector.broadcast %66 : vector<8x1xf32> to vector<8x128xf32>
    %68 = vector.broadcast %4 : vector<1x128xf32> to vector<8x128xf32>
    %69 = arith.mulf %67, %68 : vector<8x128xf32>
    %70 = arith.addf %64, %69 : vector<8x128xf32>
    %c2_34 = arith.constant 2 : index
    %c0_35 = arith.constant 0 : index
    %c0_36 = arith.constant 0 : index
    %71 = vector.load %arg3[%c2_34, %c0_35, %c0_36] : memref<3x8x1xf32, #tpu.memory_space<vmem>>, vector<1x8x1xf32>
    %72 = vector.shape_cast %71 : vector<1x8x1xf32> to vector<8x1xf32>
    %73 = vector.broadcast %72 : vector<8x1xf32> to vector<8x128xf32>
    %74 = vector.broadcast %5 : vector<1x128xf32> to vector<8x128xf32>
    %75 = arith.mulf %73, %74 : vector<8x128xf32>
    %76 = arith.addf %70, %75 : vector<8x128xf32>
    %c0_37 = arith.constant 0 : index
    %c0_38 = arith.constant 0 : index
    %c0_39 = arith.constant 0 : index
    %77 = vector.load %arg3[%c0_37, %c0_38, %c0_39] : memref<3x8x1xf32, #tpu.memory_space<vmem>>, vector<1x8x1xf32>
    %78 = vector.shape_cast %77 : vector<1x8x1xf32> to vector<8x1xf32>
    %79 = vector.broadcast %78 : vector<8x1xf32> to vector<8x128xf32>
    %80 = vector.broadcast %4 : vector<1x128xf32> to vector<8x128xf32>
    %81 = arith.mulf %79, %80 : vector<8x128xf32>
    %c1_40 = arith.constant 1 : index
    %c0_41 = arith.constant 0 : index
    %c0_42 = arith.constant 0 : index
    %82 = vector.load %arg3[%c1_40, %c0_41, %c0_42] : memref<3x8x1xf32, #tpu.memory_space<vmem>>, vector<1x8x1xf32>
    %83 = vector.shape_cast %82 : vector<1x8x1xf32> to vector<8x1xf32>
    %84 = vector.broadcast %83 : vector<8x1xf32> to vector<8x128xf32>
    %85 = vector.broadcast %5 : vector<1x128xf32> to vector<8x128xf32>
    %86 = arith.mulf %84, %85 : vector<8x128xf32>
    %87 = arith.addf %81, %86 : vector<8x128xf32>
    %c2_43 = arith.constant 2 : index
    %c0_44 = arith.constant 0 : index
    %c0_45 = arith.constant 0 : index
    %88 = vector.load %arg3[%c2_43, %c0_44, %c0_45] : memref<3x8x1xf32, #tpu.memory_space<vmem>>, vector<1x8x1xf32>
    %89 = vector.shape_cast %88 : vector<1x8x1xf32> to vector<8x1xf32>
    %90 = vector.broadcast %89 : vector<8x1xf32> to vector<8x128xf32>
    %91 = vector.broadcast %6 : vector<1x128xf32> to vector<8x128xf32>
    %92 = arith.mulf %90, %91 : vector<8x128xf32>
    %93 = arith.addf %87, %92 : vector<8x128xf32>
    %c0_46 = arith.constant 0 : index
    %c0_47 = arith.constant 0 : index
    %c0_48 = arith.constant 0 : index
    %94 = vector.load %arg3[%c0_46, %c0_47, %c0_48] : memref<3x8x1xf32, #tpu.memory_space<vmem>>, vector<1x8x1xf32>
    %95 = vector.shape_cast %94 : vector<1x8x1xf32> to vector<8x1xf32>
    %96 = vector.broadcast %95 : vector<8x1xf32> to vector<8x128xf32>
    %97 = vector.broadcast %5 : vector<1x128xf32> to vector<8x128xf32>
    %98 = arith.mulf %96, %97 : vector<8x128xf32>
    %c1_49 = arith.constant 1 : index
    %c0_50 = arith.constant 0 : index
    %c0_51 = arith.constant 0 : index
    %99 = vector.load %arg3[%c1_49, %c0_50, %c0_51] : memref<3x8x1xf32, #tpu.memory_space<vmem>>, vector<1x8x1xf32>
    %100 = vector.shape_cast %99 : vector<1x8x1xf32> to vector<8x1xf32>
    %101 = vector.broadcast %100 : vector<8x1xf32> to vector<8x128xf32>
    %102 = vector.broadcast %6 : vector<1x128xf32> to vector<8x128xf32>
    %103 = arith.mulf %101, %102 : vector<8x128xf32>
    %104 = arith.addf %98, %103 : vector<8x128xf32>
    %c2_52 = arith.constant 2 : index
    %c0_53 = arith.constant 0 : index
    %c0_54 = arith.constant 0 : index
    %105 = vector.load %arg3[%c2_52, %c0_53, %c0_54] : memref<3x8x1xf32, #tpu.memory_space<vmem>>, vector<1x8x1xf32>
    %106 = vector.shape_cast %105 : vector<1x8x1xf32> to vector<8x1xf32>
    %107 = vector.broadcast %106 : vector<8x1xf32> to vector<8x128xf32>
    %108 = vector.broadcast %7 : vector<1x128xf32> to vector<8x128xf32>
    %109 = arith.mulf %107, %108 : vector<8x128xf32>
    %110 = arith.addf %104, %109 : vector<8x128xf32>
    %c0_55 = arith.constant 0 : index
    %c0_56 = arith.constant 0 : index
    %c0_57 = arith.constant 0 : index
    %111 = vector.load %arg3[%c0_55, %c0_56, %c0_57] : memref<3x8x1xf32, #tpu.memory_space<vmem>>, vector<1x8x1xf32>
    %112 = vector.shape_cast %111 : vector<1x8x1xf32> to vector<8x1xf32>
    %113 = vector.broadcast %112 : vector<8x1xf32> to vector<8x128xf32>
    %114 = vector.broadcast %6 : vector<1x128xf32> to vector<8x128xf32>
    %115 = arith.mulf %113, %114 : vector<8x128xf32>
    %c1_58 = arith.constant 1 : index
    %c0_59 = arith.constant 0 : index
    %c0_60 = arith.constant 0 : index
    %116 = vector.load %arg3[%c1_58, %c0_59, %c0_60] : memref<3x8x1xf32, #tpu.memory_space<vmem>>, vector<1x8x1xf32>
    %117 = vector.shape_cast %116 : vector<1x8x1xf32> to vector<8x1xf32>
    %118 = vector.broadcast %117 : vector<8x1xf32> to vector<8x128xf32>
    %119 = vector.broadcast %7 : vector<1x128xf32> to vector<8x128xf32>
    %120 = arith.mulf %118, %119 : vector<8x128xf32>
    %121 = arith.addf %115, %120 : vector<8x128xf32>
    %c2_61 = arith.constant 2 : index
    %c0_62 = arith.constant 0 : index
    %c0_63 = arith.constant 0 : index
    %122 = vector.load %arg3[%c2_61, %c0_62, %c0_63] : memref<3x8x1xf32, #tpu.memory_space<vmem>>, vector<1x8x1xf32>
    %123 = vector.shape_cast %122 : vector<1x8x1xf32> to vector<8x1xf32>
    %124 = vector.broadcast %123 : vector<8x1xf32> to vector<8x128xf32>
    %125 = vector.broadcast %8 : vector<1x128xf32> to vector<8x128xf32>
    %126 = arith.mulf %124, %125 : vector<8x128xf32>
    %127 = arith.addf %121, %126 : vector<8x128xf32>
    %c0_64 = arith.constant 0 : index
    %c0_65 = arith.constant 0 : index
    %c0_66 = arith.constant 0 : index
    %128 = vector.load %arg3[%c0_64, %c0_65, %c0_66] : memref<3x8x1xf32, #tpu.memory_space<vmem>>, vector<1x8x1xf32>
    %129 = vector.shape_cast %128 : vector<1x8x1xf32> to vector<8x1xf32>
    %130 = vector.broadcast %129 : vector<8x1xf32> to vector<8x128xf32>
    %131 = vector.broadcast %7 : vector<1x128xf32> to vector<8x128xf32>
    %132 = arith.mulf %130, %131 : vector<8x128xf32>
    %c1_67 = arith.constant 1 : index
    %c0_68 = arith.constant 0 : index
    %c0_69 = arith.constant 0 : index
    %133 = vector.load %arg3[%c1_67, %c0_68, %c0_69] : memref<3x8x1xf32, #tpu.memory_space<vmem>>, vector<1x8x1xf32>
    %134 = vector.shape_cast %133 : vector<1x8x1xf32> to vector<8x1xf32>
    %135 = vector.broadcast %134 : vector<8x1xf32> to vector<8x128xf32>
    %136 = vector.broadcast %8 : vector<1x128xf32> to vector<8x128xf32>
    %137 = arith.mulf %135, %136 : vector<8x128xf32>
    %138 = arith.addf %132, %137 : vector<8x128xf32>
    %c0_70 = arith.constant 0 : index
    %c0_71 = arith.constant 0 : index
    %c0_72 = arith.constant 0 : index
    %139 = vector.load %arg3[%c0_70, %c0_71, %c0_72] : memref<3x8x1xf32, #tpu.memory_space<vmem>>, vector<1x8x1xf32>
    %140 = vector.shape_cast %139 : vector<1x8x1xf32> to vector<8x1xf32>
    %141 = vector.broadcast %140 : vector<8x1xf32> to vector<8x128xf32>
    %142 = vector.broadcast %8 : vector<1x128xf32> to vector<8x128xf32>
    %143 = arith.mulf %141, %142 : vector<8x128xf32>
    %144 = arith.maximumf %14, %25 : vector<8x128xf32>
    %145 = arith.maximumf %42, %59 : vector<8x128xf32>
    %146 = arith.maximumf %76, %93 : vector<8x128xf32>
    %147 = arith.maximumf %110, %127 : vector<8x128xf32>
    %148 = arith.maximumf %138, %143 : vector<8x128xf32>
    %149 = vector.broadcast %9 : vector<8x1xf32> to vector<8x128xf32>
    %150 = arith.addf %144, %149 : vector<8x128xf32>
    %cst = arith.constant 0.000000e+00 : f32
    %151 = vector.broadcast %cst : f32 to vector<8x128xf32>
    %152 = arith.maximumf %150, %151 : vector<8x128xf32>
    %153 = vector.broadcast %9 : vector<8x1xf32> to vector<8x128xf32>
    %154 = arith.addf %145, %153 : vector<8x128xf32>
    %cst_73 = arith.constant 0.000000e+00 : f32
    %155 = vector.broadcast %cst_73 : f32 to vector<8x128xf32>
    %156 = arith.maximumf %154, %155 : vector<8x128xf32>
    %157 = vector.broadcast %9 : vector<8x1xf32> to vector<8x128xf32>
    %158 = arith.addf %146, %157 : vector<8x128xf32>
    %cst_74 = arith.constant 0.000000e+00 : f32
    %159 = vector.broadcast %cst_74 : f32 to vector<8x128xf32>
    %160 = arith.maximumf %158, %159 : vector<8x128xf32>
    %161 = vector.broadcast %9 : vector<8x1xf32> to vector<8x128xf32>
    %162 = arith.addf %147, %161 : vector<8x128xf32>
    %cst_75 = arith.constant 0.000000e+00 : f32
    %163 = vector.broadcast %cst_75 : f32 to vector<8x128xf32>
    %164 = arith.maximumf %162, %163 : vector<8x128xf32>
    %165 = vector.broadcast %9 : vector<8x1xf32> to vector<8x128xf32>
    %166 = arith.addf %148, %165 : vector<8x128xf32>
    %cst_76 = arith.constant 0.000000e+00 : f32
    %167 = vector.broadcast %cst_76 : f32 to vector<8x128xf32>
    %168 = arith.maximumf %166, %167 : vector<8x128xf32>
    %c0_77 = arith.constant 0 : index
    %c0_78 = arith.constant 0 : index
    %169 = vector.load %arg6[%c0_77, %c0_78] : memref<16x1xf32, #tpu.memory_space<vmem>>, vector<16x1xf32>
    %c1_79 = arith.constant 1 : index
    %c0_80 = arith.constant 0 : index
    %c0_81 = arith.constant 0 : index
    %170 = vector.load %arg5[%c1_79, %c0_80, %c0_81] : memref<3x16x8xf32, #tpu.memory_space<vmem>>, vector<1x16x8xf32>
    %171 = vector.shape_cast %170 : vector<1x16x8xf32> to vector<16x8xf32>
    %cst_82 = arith.constant dense<0.000000e+00> : vector<16x128xf32>
    %172 = tpu.matmul %171, %152, %cst_82 {dimension_numbers = #tpu.dot_dimension_numbers<[1], [0], [0], [1], [0, 0, 1, 1], [], []>} : vector<16x8xf32>, vector<8x128xf32>, vector<16x128xf32> -> vector<16x128xf32>
    %c2_83 = arith.constant 2 : index
    %c0_84 = arith.constant 0 : index
    %c0_85 = arith.constant 0 : index
    %173 = vector.load %arg5[%c2_83, %c0_84, %c0_85] : memref<3x16x8xf32, #tpu.memory_space<vmem>>, vector<1x16x8xf32>
    %174 = vector.shape_cast %173 : vector<1x16x8xf32> to vector<16x8xf32>
    %cst_86 = arith.constant dense<0.000000e+00> : vector<16x128xf32>
    %175 = tpu.matmul %174, %156, %cst_86 {dimension_numbers = #tpu.dot_dimension_numbers<[1], [0], [0], [1], [0, 0, 1, 1], [], []>} : vector<16x8xf32>, vector<8x128xf32>, vector<16x128xf32> -> vector<16x128xf32>
    %176 = arith.addf %172, %175 : vector<16x128xf32>
    %c0_87 = arith.constant 0 : index
    %c0_88 = arith.constant 0 : index
    %c0_89 = arith.constant 0 : index
    %177 = vector.load %arg5[%c0_87, %c0_88, %c0_89] : memref<3x16x8xf32, #tpu.memory_space<vmem>>, vector<1x16x8xf32>
    %178 = vector.shape_cast %177 : vector<1x16x8xf32> to vector<16x8xf32>
    %cst_90 = arith.constant dense<0.000000e+00> : vector<16x128xf32>
    %179 = tpu.matmul %178, %152, %cst_90 {dimension_numbers = #tpu.dot_dimension_numbers<[1], [0], [0], [1], [0, 0, 1, 1], [], []>} : vector<16x8xf32>, vector<8x128xf32>, vector<16x128xf32> -> vector<16x128xf32>
    %c1_91 = arith.constant 1 : index
    %c0_92 = arith.constant 0 : index
    %c0_93 = arith.constant 0 : index
    %180 = vector.load %arg5[%c1_91, %c0_92, %c0_93] : memref<3x16x8xf32, #tpu.memory_space<vmem>>, vector<1x16x8xf32>
    %181 = vector.shape_cast %180 : vector<1x16x8xf32> to vector<16x8xf32>
    %cst_94 = arith.constant dense<0.000000e+00> : vector<16x128xf32>
    %182 = tpu.matmul %181, %156, %cst_94 {dimension_numbers = #tpu.dot_dimension_numbers<[1], [0], [0], [1], [0, 0, 1, 1], [], []>} : vector<16x8xf32>, vector<8x128xf32>, vector<16x128xf32> -> vector<16x128xf32>
    %183 = arith.addf %179, %182 : vector<16x128xf32>
    %c2_95 = arith.constant 2 : index
    %c0_96 = arith.constant 0 : index
    %c0_97 = arith.constant 0 : index
    %184 = vector.load %arg5[%c2_95, %c0_96, %c0_97] : memref<3x16x8xf32, #tpu.memory_space<vmem>>, vector<1x16x8xf32>
    %185 = vector.shape_cast %184 : vector<1x16x8xf32> to vector<16x8xf32>
    %cst_98 = arith.constant dense<0.000000e+00> : vector<16x128xf32>
    %186 = tpu.matmul %185, %160, %cst_98 {dimension_numbers = #tpu.dot_dimension_numbers<[1], [0], [0], [1], [0, 0, 1, 1], [], []>} : vector<16x8xf32>, vector<8x128xf32>, vector<16x128xf32> -> vector<16x128xf32>
    %187 = arith.addf %183, %186 : vector<16x128xf32>
    %c0_99 = arith.constant 0 : index
    %c0_100 = arith.constant 0 : index
    %c0_101 = arith.constant 0 : index
    %188 = vector.load %arg5[%c0_99, %c0_100, %c0_101] : memref<3x16x8xf32, #tpu.memory_space<vmem>>, vector<1x16x8xf32>
    %189 = vector.shape_cast %188 : vector<1x16x8xf32> to vector<16x8xf32>
    %cst_102 = arith.constant dense<0.000000e+00> : vector<16x128xf32>
    %190 = tpu.matmul %189, %156, %cst_102 {dimension_numbers = #tpu.dot_dimension_numbers<[1], [0], [0], [1], [0, 0, 1, 1], [], []>} : vector<16x8xf32>, vector<8x128xf32>, vector<16x128xf32> -> vector<16x128xf32>
    %c1_103 = arith.constant 1 : index
    %c0_104 = arith.constant 0 : index
    %c0_105 = arith.constant 0 : index
    %191 = vector.load %arg5[%c1_103, %c0_104, %c0_105] : memref<3x16x8xf32, #tpu.memory_space<vmem>>, vector<1x16x8xf32>
    %192 = vector.shape_cast %191 : vector<1x16x8xf32> to vector<16x8xf32>
    %cst_106 = arith.constant dense<0.000000e+00> : vector<16x128xf32>
    %193 = tpu.matmul %192, %160, %cst_106 {dimension_numbers = #tpu.dot_dimension_numbers<[1], [0], [0], [1], [0, 0, 1, 1], [], []>} : vector<16x8xf32>, vector<8x128xf32>, vector<16x128xf32> -> vector<16x128xf32>
    %194 = arith.addf %190, %193 : vector<16x128xf32>
    %c2_107 = arith.constant 2 : index
    %c0_108 = arith.constant 0 : index
    %c0_109 = arith.constant 0 : index
    %195 = vector.load %arg5[%c2_107, %c0_108, %c0_109] : memref<3x16x8xf32, #tpu.memory_space<vmem>>, vector<1x16x8xf32>
    %196 = vector.shape_cast %195 : vector<1x16x8xf32> to vector<16x8xf32>
    %cst_110 = arith.constant dense<0.000000e+00> : vector<16x128xf32>
    %197 = tpu.matmul %196, %164, %cst_110 {dimension_numbers = #tpu.dot_dimension_numbers<[1], [0], [0], [1], [0, 0, 1, 1], [], []>} : vector<16x8xf32>, vector<8x128xf32>, vector<16x128xf32> -> vector<16x128xf32>
    %198 = arith.addf %194, %197 : vector<16x128xf32>
    %c0_111 = arith.constant 0 : index
    %c0_112 = arith.constant 0 : index
    %c0_113 = arith.constant 0 : index
    %199 = vector.load %arg5[%c0_111, %c0_112, %c0_113] : memref<3x16x8xf32, #tpu.memory_space<vmem>>, vector<1x16x8xf32>
    %200 = vector.shape_cast %199 : vector<1x16x8xf32> to vector<16x8xf32>
    %cst_114 = arith.constant dense<0.000000e+00> : vector<16x128xf32>
    %201 = tpu.matmul %200, %160, %cst_114 {dimension_numbers = #tpu.dot_dimension_numbers<[1], [0], [0], [1], [0, 0, 1, 1], [], []>} : vector<16x8xf32>, vector<8x128xf32>, vector<16x128xf32> -> vector<16x128xf32>
    %c1_115 = arith.constant 1 : index
    %c0_116 = arith.constant 0 : index
    %c0_117 = arith.constant 0 : index
    %202 = vector.load %arg5[%c1_115, %c0_116, %c0_117] : memref<3x16x8xf32, #tpu.memory_space<vmem>>, vector<1x16x8xf32>
    %203 = vector.shape_cast %202 : vector<1x16x8xf32> to vector<16x8xf32>
    %cst_118 = arith.constant dense<0.000000e+00> : vector<16x128xf32>
    %204 = tpu.matmul %203, %164, %cst_118 {dimension_numbers = #tpu.dot_dimension_numbers<[1], [0], [0], [1], [0, 0, 1, 1], [], []>} : vector<16x8xf32>, vector<8x128xf32>, vector<16x128xf32> -> vector<16x128xf32>
    %205 = arith.addf %201, %204 : vector<16x128xf32>
    %c2_119 = arith.constant 2 : index
    %c0_120 = arith.constant 0 : index
    %c0_121 = arith.constant 0 : index
    %206 = vector.load %arg5[%c2_119, %c0_120, %c0_121] : memref<3x16x8xf32, #tpu.memory_space<vmem>>, vector<1x16x8xf32>
    %207 = vector.shape_cast %206 : vector<1x16x8xf32> to vector<16x8xf32>
    %cst_122 = arith.constant dense<0.000000e+00> : vector<16x128xf32>
    %208 = tpu.matmul %207, %168, %cst_122 {dimension_numbers = #tpu.dot_dimension_numbers<[1], [0], [0], [1], [0, 0, 1, 1], [], []>} : vector<16x8xf32>, vector<8x128xf32>, vector<16x128xf32> -> vector<16x128xf32>
    %209 = arith.addf %205, %208 : vector<16x128xf32>
    %210 = arith.maximumf %176, %187 : vector<16x128xf32>
    %211 = arith.maximumf %198, %209 : vector<16x128xf32>
    %212 = vector.broadcast %169 : vector<16x1xf32> to vector<16x128xf32>
    %213 = arith.addf %210, %212 : vector<16x128xf32>
    %cst_123 = arith.constant 0.000000e+00 : f32
    %214 = vector.broadcast %cst_123 : f32 to vector<16x128xf32>
    %215 = arith.maximumf %213, %214 : vector<16x128xf32>
    %216 = vector.broadcast %169 : vector<16x1xf32> to vector<16x128xf32>
    %217 = arith.addf %211, %216 : vector<16x128xf32>
    %cst_124 = arith.constant 0.000000e+00 : f32
    %218 = vector.broadcast %cst_124 : f32 to vector<16x128xf32>
    %219 = arith.maximumf %217, %218 : vector<16x128xf32>
    %c0_125 = arith.constant 0 : index
    %c0_126 = arith.constant 0 : index
    %220 = vector.load %arg8[%c0_125, %c0_126] : memref<32x1xf32, #tpu.memory_space<vmem>>, vector<32x1xf32>
    %c1_127 = arith.constant 1 : index
    %c0_128 = arith.constant 0 : index
    %c0_129 = arith.constant 0 : index
    %221 = vector.load %arg7[%c1_127, %c0_128, %c0_129] : memref<3x32x16xf32, #tpu.memory_space<vmem>>, vector<1x32x16xf32>
    %222 = vector.shape_cast %221 : vector<1x32x16xf32> to vector<32x16xf32>
    %cst_130 = arith.constant dense<0.000000e+00> : vector<32x128xf32>
    %223 = tpu.matmul %222, %215, %cst_130 {dimension_numbers = #tpu.dot_dimension_numbers<[1], [0], [0], [1], [0, 0, 1, 1], [], []>} : vector<32x16xf32>, vector<16x128xf32>, vector<32x128xf32> -> vector<32x128xf32>
    %c2_131 = arith.constant 2 : index
    %c0_132 = arith.constant 0 : index
    %c0_133 = arith.constant 0 : index
    %224 = vector.load %arg7[%c2_131, %c0_132, %c0_133] : memref<3x32x16xf32, #tpu.memory_space<vmem>>, vector<1x32x16xf32>
    %225 = vector.shape_cast %224 : vector<1x32x16xf32> to vector<32x16xf32>
    %cst_134 = arith.constant dense<0.000000e+00> : vector<32x128xf32>
    %226 = tpu.matmul %225, %219, %cst_134 {dimension_numbers = #tpu.dot_dimension_numbers<[1], [0], [0], [1], [0, 0, 1, 1], [], []>} : vector<32x16xf32>, vector<16x128xf32>, vector<32x128xf32> -> vector<32x128xf32>
    %227 = arith.addf %223, %226 : vector<32x128xf32>
    %c0_135 = arith.constant 0 : index
    %c0_136 = arith.constant 0 : index
    %c0_137 = arith.constant 0 : index
    %228 = vector.load %arg7[%c0_135, %c0_136, %c0_137] : memref<3x32x16xf32, #tpu.memory_space<vmem>>, vector<1x32x16xf32>
    %229 = vector.shape_cast %228 : vector<1x32x16xf32> to vector<32x16xf32>
    %cst_138 = arith.constant dense<0.000000e+00> : vector<32x128xf32>
    %230 = tpu.matmul %229, %215, %cst_138 {dimension_numbers = #tpu.dot_dimension_numbers<[1], [0], [0], [1], [0, 0, 1, 1], [], []>} : vector<32x16xf32>, vector<16x128xf32>, vector<32x128xf32> -> vector<32x128xf32>
    %c1_139 = arith.constant 1 : index
    %c0_140 = arith.constant 0 : index
    %c0_141 = arith.constant 0 : index
    %231 = vector.load %arg7[%c1_139, %c0_140, %c0_141] : memref<3x32x16xf32, #tpu.memory_space<vmem>>, vector<1x32x16xf32>
    %232 = vector.shape_cast %231 : vector<1x32x16xf32> to vector<32x16xf32>
    %cst_142 = arith.constant dense<0.000000e+00> : vector<32x128xf32>
    %233 = tpu.matmul %232, %219, %cst_142 {dimension_numbers = #tpu.dot_dimension_numbers<[1], [0], [0], [1], [0, 0, 1, 1], [], []>} : vector<32x16xf32>, vector<16x128xf32>, vector<32x128xf32> -> vector<32x128xf32>
    %234 = arith.addf %230, %233 : vector<32x128xf32>
    %235 = arith.maximumf %227, %234 : vector<32x128xf32>
    %236 = vector.broadcast %220 : vector<32x1xf32> to vector<32x128xf32>
    %237 = arith.addf %235, %236 : vector<32x128xf32>
    %238 = arith.negf %237 : vector<32x128xf32>
    %239 = math.exp %238 : vector<32x128xf32>
    %cst_143 = arith.constant 1.000000e+00 : f32
    %240 = vector.broadcast %cst_143 : f32 to vector<32x128xf32>
    %241 = arith.addf %240, %239 : vector<32x128xf32>
    %242 = arith.divf %240, %241 : vector<32x128xf32>
    %c0_144 = arith.constant 0 : index
    %c0_145 = arith.constant 0 : index
    %243 = vector.load %arg2[%c0_144, %c0_145] : memref<4x128xf32, #tpu.memory_space<vmem>>, vector<4x128xf32>
    %244 = vector.extract_strided_slice %243 {offsets = [0, 0], sizes = [1, 128], strides = [1, 1]} : vector<4x128xf32> to vector<1x128xf32>
    %245 = vector.extract_strided_slice %243 {offsets = [1, 0], sizes = [1, 128], strides = [1, 1]} : vector<4x128xf32> to vector<1x128xf32>
    %246 = vector.extract_strided_slice %243 {offsets = [2, 0], sizes = [1, 128], strides = [1, 1]} : vector<4x128xf32> to vector<1x128xf32>
    %247 = vector.extract_strided_slice %243 {offsets = [3, 0], sizes = [1, 128], strides = [1, 1]} : vector<4x128xf32> to vector<1x128xf32>
    %c0_146 = arith.constant 0 : index
    %c0_147 = arith.constant 0 : index
    %248 = vector.load %arg10[%c0_146, %c0_147] : memref<16x1xf32, #tpu.memory_space<vmem>>, vector<16x1xf32>
    %c1_148 = arith.constant 1 : index
    %c0_149 = arith.constant 0 : index
    %c0_150 = arith.constant 0 : index
    %249 = vector.load %arg9[%c1_148, %c0_149, %c0_150] : memref<3x16x1xf32, #tpu.memory_space<vmem>>, vector<1x16x1xf32>
    %250 = vector.shape_cast %249 : vector<1x16x1xf32> to vector<16x1xf32>
    %251 = vector.broadcast %250 : vector<16x1xf32> to vector<16x128xf32>
    %252 = vector.broadcast %244 : vector<1x128xf32> to vector<16x128xf32>
    %253 = arith.mulf %251, %252 : vector<16x128xf32>
    %c2_151 = arith.constant 2 : index
    %c0_152 = arith.constant 0 : index
    %c0_153 = arith.constant 0 : index
    %254 = vector.load %arg9[%c2_151, %c0_152, %c0_153] : memref<3x16x1xf32, #tpu.memory_space<vmem>>, vector<1x16x1xf32>
    %255 = vector.shape_cast %254 : vector<1x16x1xf32> to vector<16x1xf32>
    %256 = vector.broadcast %255 : vector<16x1xf32> to vector<16x128xf32>
    %257 = vector.broadcast %245 : vector<1x128xf32> to vector<16x128xf32>
    %258 = arith.mulf %256, %257 : vector<16x128xf32>
    %259 = arith.addf %253, %258 : vector<16x128xf32>
    %c0_154 = arith.constant 0 : index
    %c0_155 = arith.constant 0 : index
    %c0_156 = arith.constant 0 : index
    %260 = vector.load %arg9[%c0_154, %c0_155, %c0_156] : memref<3x16x1xf32, #tpu.memory_space<vmem>>, vector<1x16x1xf32>
    %261 = vector.shape_cast %260 : vector<1x16x1xf32> to vector<16x1xf32>
    %262 = vector.broadcast %261 : vector<16x1xf32> to vector<16x128xf32>
    %263 = vector.broadcast %244 : vector<1x128xf32> to vector<16x128xf32>
    %264 = arith.mulf %262, %263 : vector<16x128xf32>
    %c1_157 = arith.constant 1 : index
    %c0_158 = arith.constant 0 : index
    %c0_159 = arith.constant 0 : index
    %265 = vector.load %arg9[%c1_157, %c0_158, %c0_159] : memref<3x16x1xf32, #tpu.memory_space<vmem>>, vector<1x16x1xf32>
    %266 = vector.shape_cast %265 : vector<1x16x1xf32> to vector<16x1xf32>
    %267 = vector.broadcast %266 : vector<16x1xf32> to vector<16x128xf32>
    %268 = vector.broadcast %245 : vector<1x128xf32> to vector<16x128xf32>
    %269 = arith.mulf %267, %268 : vector<16x128xf32>
    %270 = arith.addf %264, %269 : vector<16x128xf32>
    %c2_160 = arith.constant 2 : index
    %c0_161 = arith.constant 0 : index
    %c0_162 = arith.constant 0 : index
    %271 = vector.load %arg9[%c2_160, %c0_161, %c0_162] : memref<3x16x1xf32, #tpu.memory_space<vmem>>, vector<1x16x1xf32>
    %272 = vector.shape_cast %271 : vector<1x16x1xf32> to vector<16x1xf32>
    %273 = vector.broadcast %272 : vector<16x1xf32> to vector<16x128xf32>
    %274 = vector.broadcast %246 : vector<1x128xf32> to vector<16x128xf32>
    %275 = arith.mulf %273, %274 : vector<16x128xf32>
    %276 = arith.addf %270, %275 : vector<16x128xf32>
    %c0_163 = arith.constant 0 : index
    %c0_164 = arith.constant 0 : index
    %c0_165 = arith.constant 0 : index
    %277 = vector.load %arg9[%c0_163, %c0_164, %c0_165] : memref<3x16x1xf32, #tpu.memory_space<vmem>>, vector<1x16x1xf32>
    %278 = vector.shape_cast %277 : vector<1x16x1xf32> to vector<16x1xf32>
    %279 = vector.broadcast %278 : vector<16x1xf32> to vector<16x128xf32>
    %280 = vector.broadcast %245 : vector<1x128xf32> to vector<16x128xf32>
    %281 = arith.mulf %279, %280 : vector<16x128xf32>
    %c1_166 = arith.constant 1 : index
    %c0_167 = arith.constant 0 : index
    %c0_168 = arith.constant 0 : index
    %282 = vector.load %arg9[%c1_166, %c0_167, %c0_168] : memref<3x16x1xf32, #tpu.memory_space<vmem>>, vector<1x16x1xf32>
    %283 = vector.shape_cast %282 : vector<1x16x1xf32> to vector<16x1xf32>
    %284 = vector.broadcast %283 : vector<16x1xf32> to vector<16x128xf32>
    %285 = vector.broadcast %246 : vector<1x128xf32> to vector<16x128xf32>
    %286 = arith.mulf %284, %285 : vector<16x128xf32>
    %287 = arith.addf %281, %286 : vector<16x128xf32>
    %c2_169 = arith.constant 2 : index
    %c0_170 = arith.constant 0 : index
    %c0_171 = arith.constant 0 : index
    %288 = vector.load %arg9[%c2_169, %c0_170, %c0_171] : memref<3x16x1xf32, #tpu.memory_space<vmem>>, vector<1x16x1xf32>
    %289 = vector.shape_cast %288 : vector<1x16x1xf32> to vector<16x1xf32>
    %290 = vector.broadcast %289 : vector<16x1xf32> to vector<16x128xf32>
    %291 = vector.broadcast %247 : vector<1x128xf32> to vector<16x128xf32>
    %292 = arith.mulf %290, %291 : vector<16x128xf32>
    %293 = arith.addf %287, %292 : vector<16x128xf32>
    %c0_172 = arith.constant 0 : index
    %c0_173 = arith.constant 0 : index
    %c0_174 = arith.constant 0 : index
    %294 = vector.load %arg9[%c0_172, %c0_173, %c0_174] : memref<3x16x1xf32, #tpu.memory_space<vmem>>, vector<1x16x1xf32>
    %295 = vector.shape_cast %294 : vector<1x16x1xf32> to vector<16x1xf32>
    %296 = vector.broadcast %295 : vector<16x1xf32> to vector<16x128xf32>
    %297 = vector.broadcast %246 : vector<1x128xf32> to vector<16x128xf32>
    %298 = arith.mulf %296, %297 : vector<16x128xf32>
    %c1_175 = arith.constant 1 : index
    %c0_176 = arith.constant 0 : index
    %c0_177 = arith.constant 0 : index
    %299 = vector.load %arg9[%c1_175, %c0_176, %c0_177] : memref<3x16x1xf32, #tpu.memory_space<vmem>>, vector<1x16x1xf32>
    %300 = vector.shape_cast %299 : vector<1x16x1xf32> to vector<16x1xf32>
    %301 = vector.broadcast %300 : vector<16x1xf32> to vector<16x128xf32>
    %302 = vector.broadcast %247 : vector<1x128xf32> to vector<16x128xf32>
    %303 = arith.mulf %301, %302 : vector<16x128xf32>
    %304 = arith.addf %298, %303 : vector<16x128xf32>
    %305 = arith.maximumf %259, %276 : vector<16x128xf32>
    %306 = arith.maximumf %293, %304 : vector<16x128xf32>
    %307 = vector.broadcast %248 : vector<16x1xf32> to vector<16x128xf32>
    %308 = arith.addf %305, %307 : vector<16x128xf32>
    %cst_178 = arith.constant 0.000000e+00 : f32
    %309 = vector.broadcast %cst_178 : f32 to vector<16x128xf32>
    %310 = arith.maximumf %308, %309 : vector<16x128xf32>
    %311 = vector.broadcast %248 : vector<16x1xf32> to vector<16x128xf32>
    %312 = arith.addf %306, %311 : vector<16x128xf32>
    %cst_179 = arith.constant 0.000000e+00 : f32
    %313 = vector.broadcast %cst_179 : f32 to vector<16x128xf32>
    %314 = arith.maximumf %312, %313 : vector<16x128xf32>
    %c0_180 = arith.constant 0 : index
    %c0_181 = arith.constant 0 : index
    %315 = vector.load %arg12[%c0_180, %c0_181] : memref<32x1xf32, #tpu.memory_space<vmem>>, vector<32x1xf32>
    %c1_182 = arith.constant 1 : index
    %c0_183 = arith.constant 0 : index
    %c0_184 = arith.constant 0 : index
    %316 = vector.load %arg11[%c1_182, %c0_183, %c0_184] : memref<3x32x16xf32, #tpu.memory_space<vmem>>, vector<1x32x16xf32>
    %317 = vector.shape_cast %316 : vector<1x32x16xf32> to vector<32x16xf32>
    %cst_185 = arith.constant dense<0.000000e+00> : vector<32x128xf32>
    %318 = tpu.matmul %317, %310, %cst_185 {dimension_numbers = #tpu.dot_dimension_numbers<[1], [0], [0], [1], [0, 0, 1, 1], [], []>} : vector<32x16xf32>, vector<16x128xf32>, vector<32x128xf32> -> vector<32x128xf32>
    %c2_186 = arith.constant 2 : index
    %c0_187 = arith.constant 0 : index
    %c0_188 = arith.constant 0 : index
    %319 = vector.load %arg11[%c2_186, %c0_187, %c0_188] : memref<3x32x16xf32, #tpu.memory_space<vmem>>, vector<1x32x16xf32>
    %320 = vector.shape_cast %319 : vector<1x32x16xf32> to vector<32x16xf32>
    %cst_189 = arith.constant dense<0.000000e+00> : vector<32x128xf32>
    %321 = tpu.matmul %320, %314, %cst_189 {dimension_numbers = #tpu.dot_dimension_numbers<[1], [0], [0], [1], [0, 0, 1, 1], [], []>} : vector<32x16xf32>, vector<16x128xf32>, vector<32x128xf32> -> vector<32x128xf32>
    %322 = arith.addf %318, %321 : vector<32x128xf32>
    %c0_190 = arith.constant 0 : index
    %c0_191 = arith.constant 0 : index
    %c0_192 = arith.constant 0 : index
    %323 = vector.load %arg11[%c0_190, %c0_191, %c0_192] : memref<3x32x16xf32, #tpu.memory_space<vmem>>, vector<1x32x16xf32>
    %324 = vector.shape_cast %323 : vector<1x32x16xf32> to vector<32x16xf32>
    %cst_193 = arith.constant dense<0.000000e+00> : vector<32x128xf32>
    %325 = tpu.matmul %324, %310, %cst_193 {dimension_numbers = #tpu.dot_dimension_numbers<[1], [0], [0], [1], [0, 0, 1, 1], [], []>} : vector<32x16xf32>, vector<16x128xf32>, vector<32x128xf32> -> vector<32x128xf32>
    %c1_194 = arith.constant 1 : index
    %c0_195 = arith.constant 0 : index
    %c0_196 = arith.constant 0 : index
    %326 = vector.load %arg11[%c1_194, %c0_195, %c0_196] : memref<3x32x16xf32, #tpu.memory_space<vmem>>, vector<1x32x16xf32>
    %327 = vector.shape_cast %326 : vector<1x32x16xf32> to vector<32x16xf32>
    %cst_197 = arith.constant dense<0.000000e+00> : vector<32x128xf32>
    %328 = tpu.matmul %327, %314, %cst_197 {dimension_numbers = #tpu.dot_dimension_numbers<[1], [0], [0], [1], [0, 0, 1, 1], [], []>} : vector<32x16xf32>, vector<16x128xf32>, vector<32x128xf32> -> vector<32x128xf32>
    %329 = arith.addf %325, %328 : vector<32x128xf32>
    %330 = arith.maximumf %322, %329 : vector<32x128xf32>
    %331 = vector.broadcast %315 : vector<32x1xf32> to vector<32x128xf32>
    %332 = arith.addf %330, %331 : vector<32x128xf32>
    %cst_198 = arith.constant 0.000000e+00 : f32
    %333 = vector.broadcast %cst_198 : f32 to vector<32x128xf32>
    %334 = arith.maximumf %332, %333 : vector<32x128xf32>
    %c0_199 = arith.constant 0 : index
    %c0_200 = arith.constant 0 : index
    %335 = vector.load %arg14[%c0_199, %c0_200] : memref<64x1xf32, #tpu.memory_space<vmem>>, vector<64x1xf32>
    %c1_201 = arith.constant 1 : index
    %c0_202 = arith.constant 0 : index
    %c0_203 = arith.constant 0 : index
    %336 = vector.load %arg13[%c1_201, %c0_202, %c0_203] : memref<3x64x32xf32, #tpu.memory_space<vmem>>, vector<1x64x32xf32>
    %337 = vector.shape_cast %336 : vector<1x64x32xf32> to vector<64x32xf32>
    %cst_204 = arith.constant dense<0.000000e+00> : vector<64x128xf32>
    %338 = tpu.matmul %337, %334, %cst_204 {dimension_numbers = #tpu.dot_dimension_numbers<[1], [0], [0], [1], [0, 0, 1, 1], [], []>} : vector<64x32xf32>, vector<32x128xf32>, vector<64x128xf32> -> vector<64x128xf32>
    %339 = vector.broadcast %335 : vector<64x1xf32> to vector<64x128xf32>
    %340 = arith.addf %338, %339 : vector<64x128xf32>
    %341 = arith.negf %340 : vector<64x128xf32>
    %342 = math.exp %341 : vector<64x128xf32>
    %cst_205 = arith.constant 1.000000e+00 : f32
    %343 = vector.broadcast %cst_205 : f32 to vector<64x128xf32>
    %344 = arith.addf %343, %342 : vector<64x128xf32>
    %345 = arith.divf %343, %344 : vector<64x128xf32>
    %c0_206 = arith.constant 0 : index
    %c0_207 = arith.constant 0 : index
    %346 = vector.load %arg15[%c0_206, %c0_207] : memref<32x64xf32, #tpu.memory_space<vmem>>, vector<32x64xf32>
    %cst_208 = arith.constant dense<0.000000e+00> : vector<32x128xf32>
    %347 = tpu.matmul %346, %345, %cst_208 {dimension_numbers = #tpu.dot_dimension_numbers<[1], [0], [0], [1], [0, 0, 1, 1], [], []>} : vector<32x64xf32>, vector<64x128xf32>, vector<32x128xf32> -> vector<32x128xf32>
    %c0_209 = arith.constant 0 : index
    %c0_210 = arith.constant 0 : index
    %348 = vector.load %arg16[%c0_209, %c0_210] : memref<32x1xf32, #tpu.memory_space<vmem>>, vector<32x1xf32>
    %349 = vector.broadcast %348 : vector<32x1xf32> to vector<32x128xf32>
    %350 = arith.addf %347, %349 : vector<32x128xf32>
    %c0_211 = arith.constant 0 : index
    %c0_212 = arith.constant 0 : index
    %351 = vector.load %arg17[%c0_211, %c0_212] : memref<8x32xf32, #tpu.memory_space<vmem>>, vector<8x32xf32>
    %cst_213 = arith.constant dense<0.000000e+00> : vector<8x128xf32>
    %352 = tpu.matmul %351, %242, %cst_213 {dimension_numbers = #tpu.dot_dimension_numbers<[1], [0], [0], [1], [0, 0, 1, 1], [], []>} : vector<8x32xf32>, vector<32x128xf32>, vector<8x128xf32> -> vector<8x128xf32>
    %c0_214 = arith.constant 0 : index
    %c0_215 = arith.constant 0 : index
    %353 = vector.load %arg18[%c0_214, %c0_215] : memref<8x32xf32, #tpu.memory_space<vmem>>, vector<8x32xf32>
    %cst_216 = arith.constant dense<0.000000e+00> : vector<8x128xf32>
    %354 = tpu.matmul %353, %350, %cst_216 {dimension_numbers = #tpu.dot_dimension_numbers<[1], [0], [0], [1], [0, 0, 1, 1], [], []>} : vector<8x32xf32>, vector<32x128xf32>, vector<8x128xf32> -> vector<8x128xf32>
    %355 = arith.addf %352, %354 : vector<8x128xf32>
    %c0_217 = arith.constant 0 : index
    %c0_218 = arith.constant 0 : index
    %356 = vector.load %arg19[%c0_217, %c0_218] : memref<8x1xf32, #tpu.memory_space<vmem>>, vector<8x1xf32>
    %357 = vector.broadcast %356 : vector<8x1xf32> to vector<8x128xf32>
    %358 = arith.addf %355, %357 : vector<8x128xf32>
    %c0_219 = arith.constant 0 : index
    %c0_220 = arith.constant 0 : index
    %359 = vector.load %arg20[%c0_219, %c0_220] : memref<8x128xf32, #tpu.memory_space<vmem>>, vector<8x128xf32>
    tpu.vector_store %arg20[%c0_219, %c0_220], %358 {strides = array<i32>} : memref<8x128xf32, #tpu.memory_space<vmem>>, vector<8x128xf32>,
    return
  }
  func.func @transform_0(%arg0: i32) -> (i32, i32) {
    %c0_i32 = arith.constant 0 : i32
    %c0_i32_0 = arith.constant 0 : i32
    return %c0_i32, %arg0 : i32, i32
  }
  func.func @transform_1(%arg0: i32) -> (i32, i32) {
    %c0_i32 = arith.constant 0 : i32
    %c0_i32_0 = arith.constant 0 : i32
    return %c0_i32, %arg0 : i32, i32
  }
  func.func @transform_2(%arg0: i32) -> (i32, i32, i32) {
    %c0_i32 = arith.constant 0 : i32
    %c0_i32_0 = arith.constant 0 : i32
    %c0_i32_1 = arith.constant 0 : i32
    %c0_i32_2 = arith.constant 0 : i32
    return %c0_i32, %c0_i32_0, %c0_i32_1 : i32, i32, i32
  }
  func.func @transform_3(%arg0: i32) -> (i32, i32) {
    %c0_i32 = arith.constant 0 : i32
    %c0_i32_0 = arith.constant 0 : i32
    %c0_i32_1 = arith.constant 0 : i32
    return %c0_i32, %c0_i32_0 : i32, i32
  }
  func.func @transform_4(%arg0: i32) -> (i32, i32, i32) {
    %c0_i32 = arith.constant 0 : i32
    %c0_i32_0 = arith.constant 0 : i32
    %c0_i32_1 = arith.constant 0 : i32
    %c0_i32_2 = arith.constant 0 : i32
    return %c0_i32, %c0_i32_0, %c0_i32_1 : i32, i32, i32
  }
  func.func @transform_5(%arg0: i32) -> (i32, i32) {
    %c0_i32 = arith.constant 0 : i32
    %c0_i32_0 = arith.constant 0 : i32
    %c0_i32_1 = arith.constant 0 : i32
    return %c0_i32, %c0_i32_0 : i32, i32
  }
  func.func @transform_6(%arg0: i32) -> (i32, i32, i32) {
    %c0_i32 = arith.constant 0 : i32
    %c0_i32_0 = arith.constant 0 : i32
    %c0_i32_1 = arith.constant 0 : i32
    %c0_i32_2 = arith.constant 0 : i32
    return %c0_i32, %c0_i32_0, %c0_i32_1 : i32, i32, i32
  }
  func.func @transform_7(%arg0: i32) -> (i32, i32) {
    %c0_i32 = arith.constant 0 : i32
    %c0_i32_0 = arith.constant 0 : i32
    %c0_i32_1 = arith.constant 0 : i32
    return %c0_i32, %c0_i32_0 : i32, i32
  }
  func.func @transform_8(%arg0: i32) -> (i32, i32, i32) {
    %c0_i32 = arith.constant 0 : i32
    %c0_i32_0 = arith.constant 0 : i32
    %c0_i32_1 = arith.constant 0 : i32
    %c0_i32_2 = arith.constant 0 : i32
    return %c0_i32, %c0_i32_0, %c0_i32_1 : i32, i32, i32
  }
  func.func @transform_9(%arg0: i32) -> (i32, i32) {
    %c0_i32 = arith.constant 0 : i32
    %c0_i32_0 = arith.constant 0 : i32
    %c0_i32_1 = arith.constant 0 : i32
    return %c0_i32, %c0_i32_0 : i32, i32
  }
  func.func @transform_10(%arg0: i32) -> (i32, i32, i32) {
    %c0_i32 = arith.constant 0 : i32
    %c0_i32_0 = arith.constant 0 : i32
    %c0_i32_1 = arith.constant 0 : i32
    %c0_i32_2 = arith.constant 0 : i32
    return %c0_i32, %c0_i32_0, %c0_i32_1 : i32, i32, i32
  }
  func.func @transform_11(%arg0: i32) -> (i32, i32) {
    %c0_i32 = arith.constant 0 : i32
    %c0_i32_0 = arith.constant 0 : i32
    %c0_i32_1 = arith.constant 0 : i32
    return %c0_i32, %c0_i32_0 : i32, i32
  }
  func.func @transform_12(%arg0: i32) -> (i32, i32, i32) {
    %c0_i32 = arith.constant 0 : i32
    %c0_i32_0 = arith.constant 0 : i32
    %c0_i32_1 = arith.constant 0 : i32
    %c0_i32_2 = arith.constant 0 : i32
    return %c0_i32, %c0_i32_0, %c0_i32_1 : i32, i32, i32
  }
  func.func @transform_13(%arg0: i32) -> (i32, i32) {
    %c0_i32 = arith.constant 0 : i32
    %c0_i32_0 = arith.constant 0 : i32
    %c0_i32_1 = arith.constant 0 : i32
    return %c0_i32, %c0_i32_0 : i32, i32
  }
  func.func @transform_14(%arg0: i32) -> (i32, i32) {
    %c0_i32 = arith.constant 0 : i32
    %c0_i32_0 = arith.constant 0 : i32
    %c0_i32_1 = arith.constant 0 : i32
    return %c0_i32, %c0_i32_0 : i32, i32
  }
  func.func @transform_15(%arg0: i32) -> (i32, i32) {
    %c0_i32 = arith.constant 0 : i32
    %c0_i32_0 = arith.constant 0 : i32
    %c0_i32_1 = arith.constant 0 : i32
    return %c0_i32, %c0_i32_0 : i32, i32
  }
  func.func @transform_16(%arg0: i32) -> (i32, i32) {
    %c0_i32 = arith.constant 0 : i32
    %c0_i32_0 = arith.constant 0 : i32
    %c0_i32_1 = arith.constant 0 : i32
    return %c0_i32, %c0_i32_0 : i32, i32
  }
  func.func @transform_17(%arg0: i32) -> (i32, i32) {
    %c0_i32 = arith.constant 0 : i32
    %c0_i32_0 = arith.constant 0 : i32
    %c0_i32_1 = arith.constant 0 : i32
    return %c0_i32, %c0_i32_0 : i32, i32
  }
  func.func @transform_18(%arg0: i32) -> (i32, i32) {
    %c0_i32 = arith.constant 0 : i32
    %c0_i32_0 = arith.constant 0 : i32
    %c0_i32_1 = arith.constant 0 : i32
    return %c0_i32, %c0_i32_0 : i32, i32
  }
  func.func @transform_19(%arg0: i32) -> (i32, i32) {
    %c0_i32 = arith.constant 0 : i32
    %c0_i32_0 = arith.constant 0 : i32
    return %c0_i32, %arg0 : i32, i32
  }
}

</mosaic_0001>

<bundles_post_ra>
// kernel: encoder_decoder_forward.1
= control target key start
LH: loop header
LB: loop body
LE: loop exit
PB: predicated region body
PF: predicated region fallthrough
CT: control target
= control target key end

     0   :  { %v1608_v0 = vmov 0   ;;  %vm158_vm0 = vcmask 64512   ;;  %vm474_vm1 = vcmask 130048   ;;  %s2380_s2 = inlined_call_operand.vmem [shape: f32[3,8,1], index: 2, kind: input, shape index: {}]   ;;  %s2381_s5 = inlined_call_operand.vmem [shape: f32[16,1], index: 5, kind: input, shape index: {}]   ;;  %s2382_s3 = inlined_call_operand.vmem [shape: f32[8,1], index: 3, kind: input, shape index: {}]   ;;  %s2383_s8 = inlined_call_operand.vmem [shape: f32[3,16,1], index: 8, kind: input, shape index: {}]   ;;  %s2384_s9 = inlined_call_operand.vmem [shape: f32[16,1], index: 9, kind: input, shape index: {}]   ;;  %s2385_s11 = inlined_call_operand.vmem [shape: f32[32,1], index: 11, kind: input, shape index: {}]   ;;  %s2386_s13 = inlined_call_operand.vmem [shape: f32[64,1], index: 13, kind: input, shape index: {}]   ;;  %s2387_s7 = inlined_call_operand.vmem [shape: f32[32,1], index: 7, kind: input, shape index: {}]   ;;  %s2388_s15 = inlined_call_operand.vmem [shape: f32[32,1], index: 15, kind: input, shape index: {}]   ;;  %s2389_s18 = inlined_call_operand.vmem [shape: f32[8,1], index: 18, kind: input, shape index: {}]   ;;  %s2390_s0 = inlined_call_operand.vmem [shape: f32[8,128], index: 0, kind: input, shape index: {}]   ;;  %s2391_s4 = inlined_call_operand.vmem [shape: f32[3,16,8], index: 4, kind: input, shape index: {}]   ;;  %s2392_s1 = inlined_call_operand.vmem [shape: f32[4,128], index: 1, kind: input, shape index: {}]   ;;  %s2393_s6 = inlined_call_operand.vmem [shape: f32[3,32,16], index: 6, kind: input, shape index: {}]   ;;  %s2394_s10 = inlined_call_operand.vmem [shape: f32[3,32,16], index: 10, kind: input, shape index: {}]   ;;  %s2395_s12 = inlined_call_operand.vmem [shape: f32[3,64,32], index: 12, kind: input, shape index: {}]   ;;  %s2396_s14 = inlined_call_operand.vmem [shape: f32[32,64], index: 14, kind: input, shape index: {}]   ;;  %s2397_s16 = inlined_call_operand.vmem [shape: f32[8,32], index: 16, kind: input, shape index: {}]   ;;  %s2398_s17 = inlined_call_operand.vmem [shape: f32[8,32], index: 17, kind: input, shape index: {}]   ;;  %s2399_s19 = inlined_call_operand.vmem [shape: f32[8,128], index: 19, kind: output, shape index: {}]  }
   0x1   :  { %2403 = sst [smem:[#allocation2_spill]] %s2380_s2  ;;  %1558 = vset.pattern.permute.xlu1 %v1608_v0  ;;  %1557 = vset.pattern.permute.xlu0 %v1608_v0  ;;  %v737_v13 = vld [vmem:[%s2384_s9 + $0x8] sm:$0xff]  ;;  %v736_v14 = vld [vmem:[%s2384_s9] sm:$0xff]  ;;  %v836_v15 = vld [vmem:[%s2385_s11 + $0x10] sm:$0xff] }
   0x2   :  { %2404 = sst [smem:[#allocation3_spill]] %s2381_s5  ;;  %1559 = vset.pattern.permute.xlu2 %v1608_v0  ;;  %v835_v16 = vld [vmem:[%s2385_s11 + $0x8] sm:$0xff]  ;;  %v1043_v17 = vld [vmem:[%s2386_s13 + $0x38] sm:$0xff]  ;;  %v1042_v18 = vld [vmem:[%s2386_s13 + $0x30] sm:$0xff] }
   0x3   :  { %2405 = sst [smem:[#allocation4_spill]] %s2382_s3  ;;  %v1040_v19 = vld [vmem:[%s2386_s13 + $0x20] sm:$0xff]  ;;  %v1039_v20 = vld [vmem:[%s2386_s13 + $0x18] sm:$0xff]  ;;  %v1037_v21 = vld [vmem:[%s2386_s13 + $0x8] sm:$0xff] }
   0x4   :  { %2406 = sst [smem:[#allocation5_spill]] %s2383_s8  ;;  %v1036_v22 = vld [vmem:[%s2386_s13] sm:$0xff]  ;;  %v462_v23 = vld [vmem:[%s2387_s7 + $0x10] sm:$0xff]  ;;  %v461_v24 = vld [vmem:[%s2387_s7 + $0x8] sm:$0xff] }
   0x5   :  { %s2407_s20 = sld [smem:[#allocation2_spill]]  ;;  %v1318_v25 = vld [vmem:[%s2388_s15 + $0x18] sm:$0xff]  ;;  %v1317_v26 = vld [vmem:[%s2388_s15 + $0x10] sm:$0xff]  ;;  %v1315_v27 = vld [vmem:[%s2388_s15] sm:$0xff] }
   0x6   :  { %s2408_s23 = sld [smem:[#allocation3_spill]]  ;;  %v1429_v28 = vld [vmem:[%s2389_s18] sm:$0xff] }
   0x7   :  { %s2409_s27 = sld [smem:[#allocation4_spill]]  ;;  %v62_v29 = vld [vmem:[%s2390_s0] sm:$0xff] }
   0x8   :  { %s2410_s21 = sld [smem:[#allocation5_spill]]  ;;  %v71_v30 = vperm.slane %v62_v29, 0  ;;  %v81_v31 = vperm.slane %v62_v29, 1  ;;  %v93_v36 = vperm.slane %v62_v29, 2  ;;  %v99_v39 = vperm.slane %v62_v29, 3 }
   0x9   :  { %v105_v40 = vperm.slane %v62_v29, 4  ;;  %v111_v41 = vperm.slane %v62_v29, 5  ;;  %v117_v42 = vperm.slane %v62_v29, 6  ;;  %v1799_v43 = vperm.slane %v62_v29, 7  ;;  %v1446_v29 = vld [vmem:[%s2391_s4 + $0x28] sm:$0xff] }
   0xb   :  { %v1442_v1 = vld [vmem:[%s2407_s20 + $0x8] sm:$0xff]  ;;  %v1441_v2 = vld [vmem:[%s2407_s20 + $0x10] sm:$0xff]  ;;  %v84_v4 = vld [vmem:[%s2407_s20] sm:$0xff] }
   0xc   :  { %77 = vperm.xlu0 %1557, %v1442_v1   ;;  %68 = vperm.xlu1 %1558, %v1441_v2   ;;  %v151_v3 = vld [vmem:[%s2408_s23 + $0x8] sm:$0xff]  ;;  %v150_v6 = vld [vmem:[%s2408_s23] sm:$0xff]  ;;  %v1813_v2 = vld [vmem:[%s2391_s4 + $0x10] sm:$0xff] }
   0xd   :  { %449 = vperm.xlu2 %1559, %v151_v3   ;;  %v63_v5 = vld [vmem:[%s2409_s27] sm:$0xff] }
   0xe   :  { %v1498_v7 = vld [vmem:[%s2410_s21 + $0x18] sm:$0xff]  ;;  %v773_v8 = vld [vmem:[%s2410_s21 + $0x8] sm:$0xff]  ;;  %v1497_v9 = vld [vmem:[%s2410_s21 + $0x10] sm:$0xff] }
   0xf   :  { %v1500_v10 = vld [vmem:[%s2410_s21 + $0x28] sm:$0xff]  ;;  %v772_v11 = vld [vmem:[%s2410_s21] sm:$0xff] }
  0x10   :  { %v1499_v12 = vld [vmem:[%s2410_s21 + $0x20] sm:$0xff] }
  0x14   :  { %87 = vperm.xlu0 %1557, %v84_v4   ;;  %137 = vperm.xlu1 %1558, %v63_v5  }
  0x15   :  { %444 = vperm.xlu2 %1559, %v150_v6  }
  0x1c   :  { %748 = vperm.xlu0 %1557, %v1498_v7   ;;  %781 = vperm.xlu1 %1558, %v773_v8  }
  0x1d   :  { %743 = vperm.xlu2 %1559, %v1497_v9  }
  0x24   :  { %764 = vperm.xlu0 %1557, %v1500_v10   ;;  %776 = vperm.xlu1 %1558, %v772_v11  }
  0x25   :  { %759 = vperm.xlu2 %1559, %v1499_v12  }
  0x2c   :  { %823 = vperm.xlu0 %1557, %v737_v13   ;;  %818 = vperm.xlu1 %1558, %v736_v14  }
  0x34   :  { %1020 = vperm.xlu0 %1557, %v836_v15   ;;  %1015 = vperm.xlu1 %1558, %v835_v16  }
  0x3c   :  { %1090 = vperm.xlu0 %1557, %v1043_v17   ;;  %1085 = vperm.xlu1 %1558, %v1042_v18  }
  0x44   :  { %1075 = vperm.xlu0 %1557, %v1040_v19   ;;  %1070 = vperm.xlu1 %1558, %v1039_v20  }
  0x4c   :  { %1060 = vperm.xlu0 %1557, %v1037_v21   ;;  %1055 = vperm.xlu1 %1558, %v1036_v22   ;;  %v1444_v22 = vld [vmem:[%s2391_s4 + $0x18] sm:$0xff] }
  0x54   :  { %647 = vperm.xlu0 %1557, %v462_v23   ;;  %642 = vperm.xlu1 %1558, %v461_v24  }
  0x5c   :  { %1336 = vperm.xlu0 %1557, %v1318_v25   ;;  %1331 = vperm.xlu1 %1558, %v1317_v26   ;;  %v1445_v26 = vld [vmem:[%s2391_s4 + $0x20] sm:$0xff] }
  0x64   :  { %1321 = vperm.xlu0 %1557, %v1315_v27   ;;  %1432 = vperm.xlu1 %1558, %v1429_v28  }
  0x7e   :  { %v1796_v32 = vpop.permute.xlu0 %77  ;;  %v69_v33 = vpop.permute.xlu1 %68 }
  0x7f   :  { %v80_v34 = vmul.f32 %v1796_v32, %v71_v30  ;;  %v82_v35 = vmul.f32 %v81_v31, %v69_v33  ;;  %v72_v37 = vmul.f32 %v71_v30, %v69_v33  ;;  %v91_v44 = vmul.f32 %v81_v31, %v1796_v32 }
  0x80   :  { %v94_v45 = vmul.f32 %v93_v36, %v69_v33  ;;  %v97_v46 = vmul.f32 %v93_v36, %v1796_v32  ;;  %v100_v48 = vmul.f32 %v99_v39, %v69_v33  ;;  %v103_v49 = vmul.f32 %v99_v39, %v1796_v32 }
  0x81   :  { %v83_v38 = vadd.f32 %v82_v35, %v80_v34  ;;  %v106_v50 = vmul.f32 %v105_v40, %v69_v33  ;;  %v109_v53 = vmul.f32 %v105_v40, %v1796_v32  ;;  %v112_v54 = vmul.f32 %v111_v41, %v69_v33  ;;  %v837_v34 = vld [vmem:[%s2385_s11 + $0x18] sm:$0xff] }
  0x82   :  { %v115_v55 = vmul.f32 %v111_v41, %v1796_v32  ;;  %v118_v56 = vmul.f32 %v117_v42, %v69_v33  ;;  %v121_v0 = vmul.f32 %v117_v42, %v1796_v32  ;;  %v124_v9 = vmul.f32 %v1799_v43, %v69_v33  ;;  %1025 = vperm.xlu2 %1559, %v837_v34  }
  0x83   :  { %v130_v47 = vmax.f32 %v72_v37, %v83_v38  ;;  %v127_v28 = vmul.f32 %v1799_v43, %v1796_v32  ;;  %v834_v38 = vld [vmem:[%s2385_s11] sm:$0xff] }
  0x86   :  { %v88_v51 = vpop.permute.xlu0 %87  ;;  %v1804_v52 = vpop.permute.xlu1 %137 }
  0x87   :  { %v140_v57 = vadd.f32 %v1804_v52, %v130_v47  ;;  %v90_v58 = vmul.f32 %v88_v51, %v71_v30  ;;  %v96_v59 = vmul.f32 %v88_v51, %v81_v31  ;;  %v102_v60 = vmul.f32 %v93_v36, %v88_v51  ;;  %v217_v30 = vld [vmem:[%s2391_s4] sm:$0xff]  ;;  %v218_v36 = vld [vmem:[%s2391_s4 + $0x8] sm:$0xff] }
  0x88   :  { %v108_v61 = vmul.f32 %v99_v39, %v88_v51  ;;  %v114_v62 = vmul.f32 %v105_v40, %v88_v51  ;;  %v120_v63 = vmul.f32 %v111_v41, %v88_v51  ;;  %v126_v27 = vmul.f32 %v117_v42, %v88_v51  ;;  %v1041_v39 = vld [vmem:[%s2386_s13 + $0x28] sm:$0xff]  ;;  %v1038_v40 = vld [vmem:[%s2386_s13 + $0x10] sm:$0xff]  ;;  %v463_v41 = vld [vmem:[%s2387_s7 + $0x18] sm:$0xff] }
  0x89   :  { %v141_v1 = vmax.f32 %v140_v57, 0.0  ;;  %v92_v3 = vadd.f32 %v91_v44, %v90_v58  ;;  %v98_v4 = vadd.f32 %v97_v46, %v96_v59  ;;  %v104_v5 = vadd.f32 %v103_v49, %v102_v60  ;;  %v460_v42 = vld [vmem:[%s2387_s7] sm:$0xff] }
  0x8a   :  { %v110_v6 = vadd.f32 %v109_v53, %v108_v61  ;;  %v116_v7 = vadd.f32 %v115_v55, %v114_v62  ;;  %v122_v8 = vadd.f32 %v121_v0, %v120_v63  ;;  %v128_v31 = vadd.f32 %v127_v28, %v126_v27  ;;  %1010 = vperm.xlu2 %1559, %v834_v38  }
  0x8b   :  { %209 = vmatpush.msra.mxu1 %v141_v1  ;;  %v95_v10 = vadd.f32 %v94_v45, %v92_v3  ;;  %v101_v11 = vadd.f32 %v100_v48, %v98_v4  ;;  %v107_v12 = vadd.f32 %v106_v50, %v104_v5  ;;  %v129_v33 = vmul.f32 %v1799_v43, %v88_v51  ;;  %v1316_v43 = vld [vmem:[%s2388_s15 + $0x8] sm:$0xff]  ;;  %v1885_v45 = vpop.permute.xlu2 %449 }
  0x8c   :  { %1449 = vmatmul.msk.f32.vlgmr.msra.gmra.mxu1 %vm158_vm0, %v1813_v2  ;;  %v113_v13 = vadd.f32 %v112_v54, %v110_v6  ;;  %v119_v14 = vadd.f32 %v118_v56, %v116_v7  ;;  %v125_v15 = vadd.f32 %v124_v9, %v122_v8  ;;  %v1898_v56 = vld [vmem:[%s2392_s1] sm:$0xf] }
  0x8d   :  { %263 = vmatpush.msrb.mxu1 %v141_v1  ;;  %v131_v16 = vmax.f32 %v95_v10, %v101_v11  ;;  %v134_v32 = vmax.f32 %v128_v31, %v129_v33  ;;  %v751_v58 = vperm.slane %v1898_v56, 0  ;;  %v1904_v59 = vperm.slane %v1898_v56, 1 }
  0x8e   :  { %v132_v17 = vmax.f32 %v107_v12, %v113_v13  ;;  %v133_v18 = vmax.f32 %v119_v14, %v125_v15  ;;  %v1889_v50 = vpop.permute.xlu1 %781  ;;  %v1893_v53 = vpop.permute.xlu0 %748  ;;  %v1916_v3 = vperm.slane %v1898_v56, 2 }
  0x8f   :  { %v142_v19 = vadd.f32 %v1804_v52, %v131_v16  ;;  %v148_v35 = vadd.f32 %v1804_v52, %v134_v32  ;;  %v785_v4 = vmul.f32 %v1889_v50, %v751_v58  ;;  %v753_v14 = vmul.f32 %v751_v58, %v1893_v53 }
  0x90   :  { %v144_v20 = vadd.f32 %v1804_v52, %v132_v17  ;;  %v146_v21 = vadd.f32 %v1804_v52, %v133_v18 }
  0x91   :  { %v143_v23 = vmax.f32 %v142_v19, 0.0  ;;  %v149_v37 = vmax.f32 %v148_v35, 0.0 }
  0x92   :  { %v145_v24 = vmax.f32 %v144_v20, 0.0  ;;  %v147_v25 = vmax.f32 %v146_v21, 0.0  ;;  %1080 = vperm.xlu2 %1559, %v1041_v39  }
  0x93   :  { %180 = vmatpush.msra.mxu2 %v143_v23  ;;  %v1887_v47 = vpop.permute.xlu2 %444 }
  0x94   :  { %1450 = vmatmul.msk.f32.gmra.mxu1 %vm158_vm0, %v1444_v22  ;;  %286 = vmatpush.msra.mxu0 %v145_v24 }
  0x95   :  { %311 = vmatpush.msra.mxu1 %v145_v24  ;;  %1555 = vmatpush.msra.mxu3 %v147_v25 }
  0x96   :  { %1447 = vmatmul.msk.f32.vlgmr.msra.gmra.mxu2 %vm158_vm0, %v1445_v26  ;;  %357 = vmatpush.msrb.mxu0 %v147_v25  ;;  %v1900_v57 = vpop.permute.xlu1 %776  ;;  %v1911_v0 = vpop.permute.xlu0 %764 }
  0x97   :  { %234 = vmatpush.msrb.mxu2 %v143_v23  ;;  %1455 = vmatmul.msk.f32.vlgmr.msra.gmra.mxu0 %vm158_vm0, %v1445_v26  ;;  %v784_v62 = vmul.f32 %v1900_v57, %v751_v58  ;;  %v769_v9 = vmul.f32 %v1904_v59, %v1911_v0  ;;  %v792_v10 = vmul.f32 %v1916_v3, %v1911_v0 }
  0x98   :  { %382 = vmatpush.msra.mxu0 %v147_v25  ;;  %1462 = vmatmul.msk.f32.vlgmr.msra.gmra.mxu3 %vm158_vm0, %v1446_v29 }
  0x99   :  { %334 = vmatpush.msra.mxu2 %v143_v23  ;;  %v771_v19 = vadd.f32 %v769_v9, %v753_v14 }
  0x9a   :  { %1065 = vperm.xlu2 %1559, %v1038_v40  }
  0x9b   :  { %v1891_v51 = vpop.permute.xlu2 %743 }
  0x9c   :  { %1453 = vmatmul.msk.f32.vlgmr.msrb.gmra.mxu1 %vm158_vm0, %v217_v30  ;;  %v786_v61 = vmul.f32 %v1904_v59, %v1891_v51  ;;  %v752_v6 = vmul.f32 %v751_v58, %v1891_v51 }
  0x9d   :  { %405 = vmatpush.msrb.mxu1 %v145_v24 }
  0x9e   :  { %1448 = vmatmul.msk.f32.gmra.mxu2 %vm158_vm0, %v1446_v29  ;;  %v788_v11 = vadd.f32 %v786_v61, %v784_v62  ;;  %v1933_v31 = vpop.permute.xlu1 %818  ;;  %v798_v61 = vmul.f32 %v1916_v3, %v1893_v53  ;;  %v801_v62 = vperm.slane %v1898_v56, 3 }
  0x9f   :  { %1456 = vmatmul.msk.f32.gmra.mxu0 %vm158_vm0, %v1446_v29 }
  0xa2   :  { %652 = vperm.xlu2 %1559, %v463_v41   ;;  %v557_v41 = vld [vmem:[%s2393_s6] sm:$0xff] }
  0xa3   :  { %v1909_v63 = vpop.permute.xlu2 %759 }
  0xa4   :  { %1454 = vmatmul.msk.f32.gmra.mxu1 %vm158_vm0, %v218_v36  ;;  %v768_v7 = vmul.f32 %v1904_v59, %v1909_v63  ;;  %v791_v12 = vmul.f32 %v1916_v3, %v1909_v63  ;;  %v802_v9 = vmul.f32 %v801_v62, %v1909_v63  ;;  %v1471_v63 = vld [vmem:[%s2393_s6 + $0x30] sm:$0xff] }
  0xa6   :  { %1451 = vmatmul.msk.f32.vlgmr.msrb.gmra.mxu2 %vm158_vm0, %v1813_v2  ;;  %v770_v21 = vadd.f32 %v768_v7, %v752_v6  ;;  %v803_v7 = vmul.f32 %v801_v62, %v1911_v0  ;;  %v806_v0 = vmul.f32 %v1916_v3, %v1900_v57 }
  0xa7   :  { %428 = vmatpush.msrb.mxu2 %v149_v37  ;;  %1461 = vmatmul.msk.f32.vlgmr.msrb.gmra.mxu0 %vm158_vm0, %v1445_v26 }
  0xaa   :  { %637 = vperm.xlu2 %1559, %v460_v42  }
  0xac   :  { %1457 = vmatmul.msk.f32.vlgmr.msra.gmra.mxu1 %vm158_vm0, %v1813_v2 }
  0xae   :  { %1452 = vmatmul.msk.f32.gmra.mxu2 %vm158_vm0, %v1444_v22 }
  0xaf   :  { %1463 = vmatmul.msk.f32.vlgmr.msra.gmra.mxu0 %vm158_vm0, %v1813_v2  ;;  %v787_v2 = vmul.f32 %v1904_v59, %v1893_v53 }
  0xb1   :  { %v789_v15 = vadd.f32 %v787_v2, %v785_v4 }
  0xb2   :  { %1326 = vperm.xlu2 %1559, %v1316_v43  }
  0xb3   :  { %v794_v20 = vadd.f32 %v792_v10, %v789_v15  ;;  %v559_v10 = vld [vmem:[%s2393_s6 + $0x10] sm:$0xff] }
  0xb4   :  { %1458 = vmatmul.msk.f32.gmra.mxu1 %vm158_vm0, %v1444_v22 }
  0xb5   :  { %v813_v28 = vmax.f32 %v771_v19, %v794_v20 }
  0xb6   :  { %1459 = vmatmul.msk.f32.vlgmr.msra.gmra.mxu2 %vm158_vm0, %v217_v30 }
  0xb7   :  { %1464 = vmatmul.msk.f32.gmra.mxu0 %vm158_vm0, %v1444_v22  ;;  %v793_v22 = vadd.f32 %v791_v12, %v788_v11  ;;  %v808_v11 = vmul.f32 %v801_v62, %v1891_v51 }
  0xbc   :  { %1465 = vmatmul.msk.f32.vlgmr.msrb.gmra.mxu1 %vm158_vm0, %v217_v30 }
  0xbe   :  { %1460 = vmatmul.msk.f32.gmra.mxu2 %vm158_vm0, %v218_v36 }
  0xc4   :  { %1466 = vmatmul.msk.f32.gmra.mxu1 %vm158_vm0, %v218_v36 }
  0xc6   :  { %1467 = vmatmul.msk.f32.vlgmr.msrb.gmra.mxu2 %vm158_vm0, %v1445_v26  ;;  %v1931_v26 = vpop.permute.xlu0 %823 }
  0xc7   :  { %v827_v35 = vadd.f32 %v1931_v26, %v813_v28 }
  0xc9   :  { %v829_v40 = vmax.f32 %v827_v35, 0.0  ;;  %v931_v35 = vld [vmem:[%s2394_s10 + $0x8] sm:$0xff] }
  0xce   :  { %1468 = vmatmul.msk.f32.gmra.mxu2 %vm158_vm0, %v1446_v29  ;;  %v812_v29 = vmax.f32 %v770_v21, %v793_v22  ;;  %v810_v21 = vadd.f32 %v808_v11, %v806_v0 }
  0xd0   :  { %v826_v38 = vadd.f32 %v1933_v31, %v812_v29  ;;  %v1472_v29 = vld [vmem:[%s2393_s6 + $0x38] sm:$0xff] }
  0xd2   :  { %v828_v42 = vmax.f32 %v826_v38, 0.0  ;;  %v932_v38 = vld [vmem:[%s2394_s10 + $0x10] sm:$0xff] }
 0x109   :  { %v211_v44 = vpop.f32.mrf.mxu1 }
 0x111   :  { %v214_v46 = vpop.f32.mrf.mxu1 }
 0x114   :  { %v288_v55 = vpop.f32.mrf.mxu0 }
 0x119   :  { %v182_v48 = vpop.f32.mrf.mxu2  ;;  %v265_v49 = vpop.f32.mrf.mxu1 }
 0x11a   :  { %v212_v17 = vadd.f32 %v211_v44, %v182_v48  ;;  %v1946_v44 = vld [vmem:[%s2393_s6 + $0x20] sm:$0xff] }
 0x11b   :  { %v362_v15 = vpop.f32.mrf.mxu3 }
 0x11c   :  { %v291_v8 = vpop.f32.mrf.mxu0 }
 0x121   :  { %v185_v52 = vpop.f32.mrf.mxu2  ;;  %v268_v54 = vpop.f32.mrf.mxu1 }
 0x122   :  { %v215_v23 = vadd.f32 %v214_v46, %v185_v52  ;;  %v1956_v52 = vld [vmem:[%s2393_s6 + $0x28] sm:$0xff] }
 0x124   :  { %v359_v32 = vpop.f32.mrf.mxu0 }
 0x129   :  { %v236_v60 = vpop.f32.mrf.mxu2  ;;  %v1919_v5 = vpop.f32.mrf.mxu1 }
 0x12a   :  { %v266_v1 = vadd.f32 %v265_v49, %v236_v60  ;;  %v558_v49 = vld [vmem:[%s2393_s6 + $0x8] sm:$0xff] }
 0x12c   :  { %v294_v13 = vadd.f32 %v288_v55, %v266_v1  ;;  %v384_v43 = vpop.f32.mrf.mxu0  ;;  %v795_v55 = vmul.f32 %v1900_v57, %v1904_v59  ;;  %v796_v1 = vmul.f32 %v1889_v50, %v1904_v59  ;;  %v809_v59 = vmul.f32 %v801_v62, %v1893_v53 }
 0x12e   :  { %v438_v24 = vmax.f32 %v212_v17, %v294_v13  ;;  %v800_v14 = vadd.f32 %v798_v61, %v796_v1 }
 0x130   :  { %v452_v34 = vadd.f32 %v1887_v47, %v438_v24 }
 0x131   :  { %v239_v16 = vpop.f32.mrf.mxu2  ;;  %v316_v30 = vpop.f32.mrf.mxu1 }
 0x132   :  { %v269_v18 = vadd.f32 %v268_v54, %v239_v16  ;;  %v454_v39 = vmax.f32 %v452_v34, 0.0  ;;  %v797_v54 = vmul.f32 %v1916_v3, %v1891_v51  ;;  %v805_v51 = vadd.f32 %v803_v7, %v800_v14  ;;  %v1474_v34 = vld [vmem:[%s2393_s6 + $0x48] sm:$0xff] }
 0x134   :  { %v295_v25 = vadd.f32 %v291_v8, %v269_v18  ;;  %v387_v2 = vpop.f32.mrf.mxu0  ;;  %v799_v8 = vadd.f32 %v797_v54, %v795_v55  ;;  %v2077_v54 = vpop.permute.xlu1 %1015 }
 0x136   :  { %v439_v27 = vmax.f32 %v215_v23, %v295_v25  ;;  %v804_v17 = vadd.f32 %v802_v9, %v799_v8  ;;  %v560_v23 = vld [vmem:[%s2393_s6 + $0x18] sm:$0xff] }
 0x138   :  { %v453_v33 = vadd.f32 %v1885_v45, %v439_v27 }
 0x139   :  { %v336_v36 = vpop.f32.mrf.mxu2  ;;  %v407_v48 = vpop.f32.mrf.mxu1 }
 0x13a   :  { %v455_v37 = vmax.f32 %v453_v33, 0.0  ;;  %v408_v60 = vadd.f32 %v407_v48, %v384_v43  ;;  %v337_v6 = vadd.f32 %v336_v36, %v1919_v5  ;;  %v807_v5 = vmul.f32 %v1916_v3, %v1889_v50  ;;  %v1502_v36 = vld [vmem:[%s2394_s10 + $0x28] sm:$0xff]  ;;  %v1505_v43 = vld [vmem:[%s2394_s10 + $0x40] sm:$0xff]  ;;  %v1508_v48 = vld [vmem:[%s2394_s10 + $0x58] sm:$0xff] }
 0x13b   :  { %v814_v3 = vmax.f32 %v804_v17, %v810_v21 }
 0x13c   :  { %542 = vmatpush.msrb.mxu0 %v455_v37  ;;  %616 = vmatpush.msra.mxu2 %v455_v37  ;;  %v365_v16 = vadd.f32 %v359_v32, %v337_v6  ;;  %v811_v50 = vadd.f32 %v809_v59, %v807_v5  ;;  %v1475_v37 = vld [vmem:[%s2393_s6 + $0x50] sm:$0xff] }
 0x13e   :  { %543 = vmatpush.msrb.mxu0 %v454_v39  ;;  %617 = vmatpush.msra.mxu2 %v454_v39  ;;  %v815_v57 = vmax.f32 %v805_v51, %v811_v50  ;;  %v1503_v39 = vld [vmem:[%s2394_s10 + $0x30] sm:$0xff] }
 0x13f   :  { %1489 = vmatmul.msk.f32.vlgmr.msra.gmra.mxu2 %vm474_vm1, %v557_v41  ;;  %1481 = vmatmul.msk.f32.vlgmr.msrb.gmra.mxu0 %vm474_vm1, %v1946_v44  ;;  %v933_v41 = vld [vmem:[%s2394_s10 + $0x18] sm:$0xff] }
 0x140   :  { %915 = vmatpush.msra.mxu0 %v829_v40  ;;  %989 = vmatpush.msrb.mxu2 %v829_v40  ;;  %v831_v27 = vadd.f32 %v1931_v26, %v815_v57  ;;  %v930_v26 = vld [vmem:[%s2394_s10] sm:$0xff]  ;;  %v1476_v40 = vld [vmem:[%s2393_s6 + $0x58] sm:$0xff] }
 0x141   :  { %v339_v46 = vpop.f32.mrf.mxu2  ;;  %v410_v4 = vpop.f32.mrf.mxu1 }
 0x142   :  { %916 = vmatpush.msra.mxu0 %v828_v42  ;;  %990 = vmatpush.msrb.mxu2 %v828_v42  ;;  %v340_v12 = vadd.f32 %v339_v46, %v316_v30  ;;  %v411_v13 = vadd.f32 %v410_v4, %v387_v2  ;;  %v830_v30 = vadd.f32 %v1933_v31, %v814_v3  ;;  %v833_v32 = vmax.f32 %v831_v27, 0.0  ;;  %v1501_v31 = vld [vmem:[%s2394_s10 + $0x20] sm:$0xff]  ;;  %v1504_v42 = vld [vmem:[%s2394_s10 + $0x38] sm:$0xff]  ;;  %v1507_v46 = vld [vmem:[%s2394_s10 + $0x50] sm:$0xff] }
 0x144   :  { %v366_v19 = vadd.f32 %v362_v15, %v340_v12 }
 0x147   :  { %1490 = vmatmul.msk.f32.gmra.mxu2 %vm474_vm1, %v558_v49  ;;  %1482 = vmatmul.msk.f32.gmra.mxu0 %vm474_vm1, %v1956_v52  ;;  %v2073_v49 = vpop.permute.xlu2 %1025 }
 0x149   :  { %v430_v58 = vpop.f32.mrf.mxu2 }
 0x14a   :  { %v436_v56 = vadd.f32 %v430_v58, %v408_v60  ;;  %v2081_v58 = vpop.permute.xlu0 %1020  ;;  %v2083_v60 = vpop.permute.xlu1 %1085 }
 0x14c   :  { %v440_v53 = vmax.f32 %v365_v16, %v436_v56 }
 0x14e   :  { %v456_v25 = vadd.f32 %v1887_v47, %v440_v53  ;;  %v832_v47 = vmax.f32 %v830_v30, 0.0 }
 0x14f   :  { %1491 = vmatmul.msk.f32.gmra.mxu2 %vm474_vm1, %v559_v10  ;;  %1483 = vmatmul.msk.f32.gmra.mxu0 %vm474_vm1, %v1471_v63 }
 0x150   :  { %v458_v33 = vmax.f32 %v456_v25, 0.0 }
 0x151   :  { %v433_v18 = vpop.f32.mrf.mxu2 }
 0x152   :  { %v437_v20 = vadd.f32 %v433_v18, %v411_v13  ;;  %v2087_v2 = vpop.permute.xlu0 %1090  ;;  %v2089_v4 = vpop.permute.xlu1 %1070 }
 0x154   :  { %v441_v22 = vmax.f32 %v366_v19, %v437_v20 }
 0x156   :  { %v457_v24 = vadd.f32 %v1885_v45, %v441_v22  ;;  %v1473_v45 = vld [vmem:[%s2393_s6 + $0x40] sm:$0xff] }
 0x157   :  { %1492 = vmatmul.msk.f32.gmra.mxu2 %vm474_vm1, %v560_v23  ;;  %1484 = vmatmul.msk.f32.gmra.mxu0 %vm474_vm1, %v1472_v29 }
 0x158   :  { %v459_v28 = vmax.f32 %v457_v24, 0.0 }
 0x15a   :  { %501 = vmatpush.msrb.mxu3 %v459_v28  ;;  %575 = vmatpush.msra.mxu1 %v459_v28  ;;  %v2091_v10 = vpop.permute.xlu0 %1075  ;;  %v2093_v12 = vpop.permute.xlu1 %1055 }
 0x15c   :  { %502 = vmatpush.msrb.mxu3 %v458_v33  ;;  %576 = vmatpush.msra.mxu1 %v458_v33 }
 0x15d   :  { %1477 = vmatmul.msk.f32.vlgmr.msrb.gmra.mxu3 %vm474_vm1, %v1473_v45  ;;  %1485 = vmatmul.msk.f32.vlgmr.msra.gmra.mxu1 %vm474_vm1, %v1946_v44  ;;  %v1506_v44 = vld [vmem:[%s2394_s10 + $0x48] sm:$0xff] }
 0x15e   :  { %948 = vmatpush.msrb.mxu1 %v833_v32  ;;  %874 = vmatpush.msra.mxu3 %v833_v32 }
 0x15f   :  { %1521 = vmatmul.msk.f32.vlgmr.msrb.gmra.mxu2 %vm474_vm1, %v930_v26  ;;  %1513 = vmatmul.msk.f32.vlgmr.msra.gmra.mxu0 %vm474_vm1, %v1501_v31 }
 0x160   :  { %949 = vmatpush.msrb.mxu1 %v832_v47  ;;  %875 = vmatpush.msra.mxu3 %v832_v47 }
 0x162   :  { %v2095_v17 = vpop.permute.xlu0 %1060  ;;  %v643_v20 = vpop.permute.xlu1 %642 }
 0x165   :  { %1478 = vmatmul.msk.f32.gmra.mxu3 %vm474_vm1, %v1474_v34  ;;  %1486 = vmatmul.msk.f32.gmra.mxu1 %vm474_vm1, %v1956_v52  ;;  %v2075_v52 = vpop.permute.xlu2 %1010 }
 0x167   :  { %1522 = vmatmul.msk.f32.gmra.mxu2 %vm474_vm1, %v931_v35  ;;  %1514 = vmatmul.msk.f32.gmra.mxu0 %vm474_vm1, %v1502_v36 }
 0x16d   :  { %1479 = vmatmul.msk.f32.gmra.mxu3 %vm474_vm1, %v1475_v37  ;;  %1487 = vmatmul.msk.f32.gmra.mxu1 %vm474_vm1, %v1471_v63  ;;  %v2079_v55 = vpop.permute.xlu2 %1080 }
 0x16f   :  { %1523 = vmatmul.msk.f32.gmra.mxu2 %vm474_vm1, %v932_v38  ;;  %1515 = vmatmul.msk.f32.gmra.mxu0 %vm474_vm1, %v1503_v39 }
 0x175   :  { %1480 = vmatmul.msk.f32.gmra.mxu3 %vm474_vm1, %v1476_v40  ;;  %1488 = vmatmul.msk.f32.gmra.mxu1 %vm474_vm1, %v1472_v29  ;;  %v2085_v1 = vpop.permute.xlu2 %1065  ;;  %v648_v29 = vpop.permute.xlu0 %647 }
 0x177   :  { %1524 = vmatmul.msk.f32.gmra.mxu2 %vm474_vm1, %v933_v41  ;;  %1516 = vmatmul.msk.f32.gmra.mxu0 %vm474_vm1, %v1504_v42 }
 0x17d   :  { %1509 = vmatmul.msk.f32.vlgmr.msra.gmra.mxu3 %vm474_vm1, %v1505_v43  ;;  %1517 = vmatmul.msk.f32.vlgmr.msrb.gmra.mxu1 %vm474_vm1, %v1501_v31  ;;  %v653_v9 = vpop.permute.xlu2 %652 }
 0x185   :  { %1510 = vmatmul.msk.f32.gmra.mxu3 %vm474_vm1, %v1506_v44  ;;  %1518 = vmatmul.msk.f32.gmra.mxu1 %vm474_vm1, %v1502_v36  ;;  %v638_v16 = vpop.permute.xlu2 %637 }
 0x18d   :  { %1511 = vmatmul.msk.f32.gmra.mxu3 %vm474_vm1, %v1507_v46  ;;  %1519 = vmatmul.msk.f32.gmra.mxu1 %vm474_vm1, %v1503_v39 }
 0x195   :  { %1512 = vmatmul.msk.f32.gmra.mxu3 %vm474_vm1, %v1508_v48  ;;  %1520 = vmatmul.msk.f32.gmra.mxu1 %vm474_vm1, %v1504_v42 }
 0x1bc   :  { %v545_v62 = vpop.f32.mrf.mxu0 }
 0x1c2   :  { %v619_v61 = vpop.f32.mrf.mxu2 }
 0x1c4   :  { %v548_v7 = vpop.f32.mrf.mxu0 }
 0x1ca   :  { %v622_v6 = vpop.f32.mrf.mxu2 }
 0x1cc   :  { %v551_v5 = vpop.f32.mrf.mxu0 }
 0x1d2   :  { %v625_v59 = vpop.f32.mrf.mxu2 }
 0x1d4   :  { %v554_v57 = vpop.f32.mrf.mxu0 }
 0x1da   :  { %v578_v8 = vpop.f32.mrf.mxu1  ;;  %v628_v50 = vpop.f32.mrf.mxu2 }
 0x1db   :  { %v620_v13 = vadd.f32 %v619_v61, %v578_v8 }
 0x1dc   :  { %v2097_v31 = vpop.f32.mrf.mxu0 }
 0x1e0   :  { %v504_v11 = vpop.f32.mrf.mxu3 }
 0x1e1   :  { %v546_v56 = vadd.f32 %v545_v62, %v504_v11 }
 0x1e2   :  { %v581_v14 = vpop.f32.mrf.mxu1  ;;  %v992_v33 = vpop.f32.mrf.mxu2 }
 0x1e3   :  { %v631_v0 = vmax.f32 %v546_v56, %v620_v13  ;;  %v623_v15 = vadd.f32 %v622_v6, %v581_v14 }
 0x1e4   :  { %v921_v48 = vpop.f32.mrf.mxu0 }
 0x1e5   :  { %v655_v18 = vadd.f32 %v638_v16, %v631_v0 }
 0x1e7   :  { %v1493_v22 = vmul.f32 -1.442695, %v655_v18 }
 0x1e8   :  { %v507_v63 = vpop.f32.mrf.mxu3 }
 0x1e9   :  { %v549_v51 = vadd.f32 %v548_v7, %v507_v63  ;;  %1560 = vpow2.f32 %v1493_v22 }
 0x1ea   :  { %v584_v53 = vpop.f32.mrf.mxu1  ;;  %v995_v46 = vpop.f32.mrf.mxu2 }
 0x1eb   :  { %v632_v19 = vmax.f32 %v549_v51, %v623_v15  ;;  %v626_v23 = vadd.f32 %v625_v59, %v584_v53 }
 0x1ec   :  { %v924_v0 = vpop.f32.mrf.mxu0 }
 0x1ed   :  { %v656_v21 = vadd.f32 %v643_v20, %v632_v19 }
 0x1ef   :  { %v1494_v3 = vmul.f32 -1.442695, %v656_v21  ;;  %v1561_v47 = vpop.eup %1560 }
 0x1f0   :  { %v510_v24 = vpop.f32.mrf.mxu3  ;;  %v2099_v36 = vadd.f32 1.0, %v1561_v47 }
 0x1f1   :  { %v552_v25 = vadd.f32 %v551_v5, %v510_v24  ;;  %1562 = vpow2.f32 %v1494_v3 }
 0x1f2   :  { %v587_v28 = vpop.f32.mrf.mxu1  ;;  %v998_v13 = vpop.f32.mrf.mxu2  ;;  %vm680_vm6 = vweird.f32 %v2099_v36 }
 0x1f3   :  { %v633_v27 = vmax.f32 %v552_v25, %v626_v23  ;;  %v629_v32 = vadd.f32 %v628_v50, %v587_v28 }
 0x1f5   :  { %v657_v30 = vadd.f32 %v648_v29, %v633_v27 }
 0x1f7   :  { %v1495_v45 = vmul.f32 -1.442695, %v657_v30  ;;  %v1563_v34 = vpop.eup %1562 }
 0x1f8   :  { %v513_v26 = vpop.f32.mrf.mxu3  ;;  %v2101_v39 = vadd.f32 1.0, %v1563_v34 }
 0x1f9   :  { %1564 = vpow2.f32 %v1495_v45  ;;  %v555_v35 = vadd.f32 %v554_v57, %v513_v26 }
 0x1fa   :  { %v951_v38 = vpop.f32.mrf.mxu1  ;;  %1566 = vrcp.f32 %v2099_v36  ;;  %vm695_vm2 = vweird.f32 %v2101_v39  ;;  %v699_v21 = vand.u32 2147483647, %v2101_v39  ;;  %v701_v22 = vand.u32 2147483648, %v2101_v39  ;;  %v1001_v25 = vpop.f32.mrf.mxu2 }
 0x1fb   :  { %v634_v37 = vmax.f32 %v555_v35, %v629_v32  ;;  %1568 = vrcp.f32 %v2101_v39  ;;  %v2123_v20 = vadd.f32 %v992_v33, %v951_v38  ;;  %v927_v32 = vpop.f32.mrf.mxu0 }
 0x1fc   :  { %vm700_vm15 = vcmp.eq.f32.partialorder %v699_v21, 8.507059e+37  ;;  %v1529_v21 = vld [vmem:[%s2395_s12 + $0x60] sm:$0xff] }
 0x1fd   :  { %v658_v40 = vadd.f32 %v653_v9, %v634_v37 }
 0x1ff   :  { %v1565_v41 = vpop.eup %1564  ;;  %v1496_v42 = vmul.f32 -1.442695, %v658_v40 }
 0x200   :  { %v2105_v43 = vadd.f32 1.0, %v1565_v41  ;;  %v877_v44 = vpop.f32.mrf.mxu3  ;;  %v2108_v62 = vpop.eup %1566 }
 0x201   :  { %1570 = vpow2.f32 %v1496_v42  ;;  %v2110_v6 = vpop.eup %1568  ;;  %v676_v5 = vmul.f32 %v2108_v62, %v2099_v36  ;;  %vm681_vm3 = vweird.f32 %v2108_v62  ;;  %v919_v41 = vadd.f32 %v2097_v31, %v877_v44 }
 0x202   :  { %1572 = vrcp.f32 %v2105_v43  ;;  %v954_v61 = vpop.f32.mrf.mxu1  ;;  %v691_v59 = vmul.f32 %v2110_v6, %v2101_v39  ;;  %vm710_vm4 = vweird.f32 %v2105_v43  ;;  %vm696_vm5 = vweird.f32 %v2110_v6  ;;  %vm682_vm0 = vmor %vm680_vm6, %vm681_vm3 }
 0x203   :  { %v677_v16 = vsub.f32 1.0, %v676_v5  ;;  %v996_v45 = vadd.f32 %v995_v46, %v954_v61  ;;  %v714_v47 = vand.u32 2147483647, %v2105_v43  ;;  %v716_v26 = vand.u32 2147483648, %v2105_v43  ;;  %vm2152_vm13 = vmor %vm695_vm2, %vm696_vm5 }
 0x204   :  { %v692_v63 = vsub.f32 1.0, %v691_v59  ;;  %v684_v44 = vand.u32 2147483647, %v2099_v36  ;;  %v1004_v39 = vmax.f32 %v919_v41, %v2123_v20  ;;  %vm1093_vm2 = vcmask 261120  }
 0x205   :  { %v678_v3 = vmul.f32 %v2108_v62, %v677_v16  ;;  %vm715_vm14 = vcmp.eq.f32.partialorder %v714_v47, 8.507059e+37 }
 0x206   :  { %v693_v50 = vmul.f32 %v2110_v6, %v692_v63  ;;  %vm685_vm1 = vcmp.eq.f32.partialorder %v684_v44, 8.507059e+37  ;;  %v1028_v20 = vadd.f32 %v2075_v52, %v1004_v39  ;;  %v1527_v52 = vld [vmem:[%s2395_s12 + $0x50] sm:$0xff] }
 0x207   :  { %v1571_v7 = vpop.eup %1570  ;;  %v679_v61 = vadd.f32 %v2108_v62, %v678_v3  ;;  %v1532_v3 = vld [vmem:[%s2395_s12 + $0x78] sm:$0xff] }
 0x208   :  { %v2112_v8 = vpop.eup %1572  ;;  %v674_v9 = vadd.f32 1.0, %v1571_v7  ;;  %v880_v11 = vpop.f32.mrf.mxu3  ;;  %v694_v34 = vadd.f32 %v2110_v6, %v693_v50  ;;  %v1032_v50 = vmax.f32 %v1028_v20, 0.0 }
 0x209   :  { %v706_v56 = vmul.f32 %v2112_v8, %v2105_v43  ;;  %vm711_vm7 = vweird.f32 %v2112_v8  ;;  %v922_v35 = vadd.f32 %v921_v48, %v880_v11  ;;  %v717_v11 = vor.u32 1.1754944e-38, %v716_v26 }
 0x20a   :  { %1574 = vrcp.f32 %v674_v9  ;;  %v957_v14 = vpop.f32.mrf.mxu1  ;;  %v729_v27 = vand.u32 2147483647, %v674_v9  ;;  %v731_v28 = vand.u32 2147483648, %v674_v9  ;;  %vm725_vm9 = vweird.f32 %v674_v9  ;;  %vm2139_vm10 = vmor %vm710_vm4, %vm711_vm7 }
 0x20b   :  { %v707_v15 = vsub.f32 1.0, %v706_v56  ;;  %v999_v23 = vadd.f32 %v998_v13, %v957_v14  ;;  %v686_v13 = vand.u32 2147483648, %v2099_v36  ;;  %v1005_v59 = vmax.f32 %v922_v35, %v996_v45 }
 0x20c   :  { %vm730_vm12 = vcmp.eq.f32.partialorder %v729_v27, 8.507059e+37  ;;  %v732_v46 = vor.u32 1.1754944e-38, %v731_v28  ;;  %v683_v63 = vsel %vm682_vm0, %v2108_v62, %v679_v61  ;;  %v1528_v62 = vld [vmem:[%s2395_s12 + $0x58] sm:$0xff] }
 0x20d   :  { %v708_v53 = vmul.f32 %v2112_v8, %v707_v15 }
 0x20f   :  { %v709_v33 = vadd.f32 %v2112_v8, %v708_v53 }
 0x210   :  { %v1575_v51 = vpop.eup %1574  ;;  %v883_v18 = vpop.f32.mrf.mxu3 }
 0x211   :  { %v721_v19 = vmul.f32 %v1575_v51, %v674_v9  ;;  %v925_v29 = vadd.f32 %v924_v0, %v883_v18  ;;  %vm726_vm8 = vweird.f32 %v1575_v51  ;;  %v713_v9 = vsel %vm2139_vm10, %v2112_v8, %v709_v33 }
 0x212   :  { %v960_v24 = vpop.f32.mrf.mxu1  ;;  %vm727_vm11 = vmor %vm725_vm9, %vm726_vm8  ;;  %v698_v8 = vsel %vm2152_vm13, %v2110_v6, %v694_v34  ;;  %v718_v5 = vsel %vm715_vm14, %v717_v11, %v713_v9  ;;  %v702_v0 = vor.u32 1.1754944e-38, %v701_v22  ;;  %v687_v18 = vor.u32 1.1754944e-38, %v686_v13  ;;  %v1530_v22 = vld [vmem:[%s2395_s12 + $0x68] sm:$0xff] }
 0x213   :  { %v722_v57 = vsub.f32 1.0, %v721_v19  ;;  %v1002_v37 = vadd.f32 %v1001_v25, %v960_v24  ;;  %v1006_v7 = vmax.f32 %v925_v29, %v999_v23  ;;  %v1029_v19 = vadd.f32 %v2077_v54, %v1005_v59  ;;  %v1526_v54 = vld [vmem:[%s2395_s12 + $0x48] sm:$0xff] }
 0x214   :  { %v688_v53 = vsel %vm685_vm1, %v687_v18, %v683_v63 }
 0x215   :  { %v723_v30 = vmul.f32 %v1575_v51, %v722_v57  ;;  %v1030_v16 = vadd.f32 %v2081_v58, %v1006_v7  ;;  %v1525_v58 = vld [vmem:[%s2395_s12 + $0x40] sm:$0xff]  ;;  %v1531_v57 = vld [vmem:[%s2395_s12 + $0x70] sm:$0xff] }
 0x217   :  { %v724_v38 = vadd.f32 %v1575_v51, %v723_v30  ;;  %v1034_v36 = vmax.f32 %v1030_v16, 0.0 }
 0x218   :  { %v886_v42 = vpop.f32.mrf.mxu3 }
 0x219   :  { %v928_v56 = vadd.f32 %v927_v32, %v886_v42  ;;  %v728_v48 = vsel %vm727_vm11, %v1575_v51, %v724_v38  ;;  %v703_v51 = vsel %vm700_vm15, %v702_v0, %v698_v8 }
 0x21a   :  { %v733_v43 = vsel %vm730_vm12, %v732_v46, %v728_v48 }
 0x21b   :  { %v1007_v14 = vmax.f32 %v928_v56, %v1002_v37  ;;  %1421 = vmatpush.msra.mxu2 %v733_v43 }
 0x21d   :  { %v1031_v15 = vadd.f32 %v2073_v49, %v1007_v14  ;;  %1422 = vmatpush.msra.mxu2 %v718_v5  ;;  %v1033_v49 = vmax.f32 %v1029_v19, 0.0 }
 0x21f   :  { %v1035_v6 = vmax.f32 %v1031_v15, 0.0  ;;  %1423 = vmatpush.msra.mxu2 %v703_v51 }
 0x221   :  { %1130 = vmatpush.msrb.mxu3 %v1035_v6  ;;  %1424 = vmatpush.msra.mxu2 %v688_v53 }
 0x223   :  { %1131 = vmatpush.msrb.mxu3 %v1034_v36 }
 0x225   :  { %1132 = vmatpush.msrb.mxu3 %v1033_v49 }
 0x227   :  { %1133 = vmatpush.msrb.mxu3 %v1032_v50 }
 0x228   :  { %1533 = vmatmul.msk.f32.vlgmr.msrb.gmra.mxu3 %vm1093_vm2, %v1525_v58 }
 0x230   :  { %1534 = vmatmul.msk.f32.gmra.mxu3 %vm1093_vm2, %v1526_v54 }
 0x238   :  { %1535 = vmatmul.msk.f32.gmra.mxu3 %vm1093_vm2, %v1527_v52 }
 0x240   :  { %1536 = vmatmul.msk.f32.gmra.mxu3 %vm1093_vm2, %v1528_v62 }
 0x248   :  { %1537 = vmatmul.msk.f32.gmra.mxu3 %vm1093_vm2, %v1529_v21 }
 0x250   :  { %1538 = vmatmul.msk.f32.gmra.mxu3 %vm1093_vm2, %v1530_v22 }
 0x258   :  { %1539 = vmatmul.msk.f32.gmra.mxu3 %vm1093_vm2, %v1531_v57 }
 0x260   :  { %1540 = vmatmul.msk.f32.gmra.mxu3 %vm1093_vm2, %v1532_v3 }
 0x2ab   :  { %v1135_v23 = vpop.f32.mrf.mxu3 }
 0x2ac   :  { %v1136_v29 = vadd.f32 %v1135_v23, %v2093_v12 }
 0x2ae   :  { %v1541_v32 = vmul.f32 -1.442695, %v1136_v29 }
 0x2b0   :  { %1576 = vpow2.f32 %v1541_v32 }
 0x2b3   :  { %v1138_v24 = vpop.f32.mrf.mxu3 }
 0x2b4   :  { %v1139_v30 = vadd.f32 %v1138_v24, %v2095_v17 }
 0x2b6   :  { %v1542_v47 = vmul.f32 -1.442695, %v1139_v30 }
 0x2b8   :  { %1578 = vpow2.f32 %v1542_v47 }
 0x2bb   :  { %v1141_v25 = vpop.f32.mrf.mxu3 }
 0x2bc   :  { %v1142_v33 = vadd.f32 %v1141_v25, %v2085_v1  ;;  %v1577_v1 = vpop.eup %1576 }
 0x2be   :  { %v1543_v34 = vmul.f32 -1.442695, %v1142_v33  ;;  %v1579_v41 = vpop.eup %1578 }
 0x2c0   :  { %1580 = vpow2.f32 %v1543_v34 }
 0x2c3   :  { %v1144_v27 = vpop.f32.mrf.mxu3 }
 0x2c4   :  { %v1145_v45 = vadd.f32 %v1144_v27, %v2089_v4 }
 0x2c6   :  { %v1544_v37 = vmul.f32 -1.442695, %v1145_v45  ;;  %v1581_v42 = vpop.eup %1580 }
 0x2c7   :  { %v2214_v56 = vadd.f32 1.0, %v1581_v42 }
 0x2c8   :  { %1582 = vpow2.f32 %v1544_v37 }
 0x2cb   :  { %v1147_v28 = vpop.f32.mrf.mxu3 }
 0x2cc   :  { %v1148_v38 = vadd.f32 %v1147_v28, %v2091_v10  ;;  %v2212_v10 = vadd.f32 1.0, %v1579_v41 }
 0x2ce   :  { %v1545_v12 = vmul.f32 -1.442695, %v1148_v38  ;;  %v1583_v61 = vpop.eup %1582 }
 0x2cf   :  { %v2216_v48 = vadd.f32 1.0, %v1583_v61 }
 0x2d3   :  { %v1150_v26 = vpop.f32.mrf.mxu3 }
 0x2d4   :  { %v1151_v35 = vadd.f32 %v1150_v26, %v2079_v55  ;;  %v2210_v55 = vadd.f32 1.0, %v1577_v1 }
 0x2d6   :  { %v1546_v40 = vmul.f32 -1.442695, %v1151_v35 }
 0x2d8   :  { %1584 = vpow2.f32 %v1546_v40 }
 0x2d9   :  { %1586 = vpow2.f32 %v1545_v12 }
 0x2db   :  { %v1153_v17 = vpop.f32.mrf.mxu3 }
 0x2dc   :  { %v1154_v4 = vadd.f32 %v1153_v17, %v2083_v60 }
 0x2de   :  { %v1547_v46 = vmul.f32 -1.442695, %v1154_v4  ;;  %v1585_v7 = vpop.eup %1584 }
 0x2df   :  { %v1587_v9 = vpop.eup %1586  ;;  %v2219_v43 = vadd.f32 1.0, %v1585_v7 }
 0x2e0   :  { %1588 = vpow2.f32 %v1547_v46  ;;  %v2225_v44 = vadd.f32 1.0, %v1587_v9 }
 0x2e1   :  { %1590 = vrcp.f32 %v2210_v55  ;;  %vm1271_vm14 = vweird.f32 %v2219_v43  ;;  %v1275_v12 = vand.u32 2147483647, %v2219_v43  ;;  %v1277_v17 = vand.u32 2147483648, %v2219_v43 }
 0x2e2   :  { %1592 = vrcp.f32 %v2212_v10  ;;  %v1262_v7 = vand.u32 2147483648, %v2225_v44 }
 0x2e3   :  { %v1156_v60 = vpop.f32.mrf.mxu3  ;;  %1594 = vrcp.f32 %v2214_v56 }
 0x2e4   :  { %v1157_v11 = vadd.f32 %v1156_v60, %v2087_v2  ;;  %1596 = vrcp.f32 %v2216_v48 }
 0x2e5   :  { %1598 = vrcp.f32 %v2219_v43 }
 0x2e6   :  { %v1589_v31 = vpop.eup %1588  ;;  %v1548_v13 = vmul.f32 -1.442695, %v1157_v11 }
 0x2e7   :  { %v2228_v59 = vadd.f32 1.0, %v1589_v31  ;;  %v2230_v14 = vpop.eup %1590  ;;  %v1278_v31 = vor.u32 1.1754944e-38, %v1277_v17 }
 0x2e8   :  { %1600 = vpow2.f32 %v1548_v13  ;;  %v2233_v8 = vpop.eup %1592  ;;  %v1192_v6 = vmul.f32 %v2230_v14, %v2210_v55  ;;  %vm1197_vm0 = vweird.f32 %v2230_v14 }
 0x2e9   :  { %1602 = vrcp.f32 %v2228_v59  ;;  %v2236_v2 = vpop.eup %1594  ;;  %v1207_v18 = vmul.f32 %v2233_v8, %v2212_v10  ;;  %vm1286_vm7 = vweird.f32 %v2228_v59  ;;  %v1292_v26 = vand.u32 2147483648, %v2228_v59 }
 0x2ea   :  { %1604 = vrcp.f32 %v2225_v44  ;;  %v2238_v5 = vpop.eup %1596  ;;  %v1222_v53 = vmul.f32 %v2236_v2, %v2214_v56  ;;  %v1193_v58 = vsub.f32 1.0, %v1192_v6  ;;  %vm1227_vm6 = vweird.f32 %v2236_v2 }
 0x2eb   :  { %v2240_v0 = vpop.eup %1598  ;;  %v1237_v20 = vmul.f32 %v2238_v5, %v2216_v48  ;;  %v1208_v50 = vsub.f32 1.0, %v1207_v18  ;;  %vm1242_vm3 = vweird.f32 %v2238_v5  ;;  %v1290_v37 = vand.u32 2147483647, %v2228_v59 }
 0x2ec   :  { %v1267_v19 = vmul.f32 %v2240_v0, %v2219_v43  ;;  %v1223_v52 = vsub.f32 1.0, %v1222_v53  ;;  %v2265_v24 = vmul.f32 %v2230_v14, %v1193_v58  ;;  %vm1272_vm8 = vweird.f32 %v2240_v0 }
 0x2ed   :  { %v1238_v22 = vsub.f32 1.0, %v1237_v20  ;;  %v2262_v23 = vmul.f32 %v2233_v8, %v1208_v50  ;;  %vm1212_vm12 = vweird.f32 %v2233_v8  ;;  %v1293_v46 = vor.u32 1.1754944e-38, %v1292_v26  ;;  %vm2296_vm1 = vmor %vm1271_vm14, %vm1272_vm8 }
 0x2ee   :  { %v1601_v39 = vpop.eup %1600  ;;  %v1268_v54 = vsub.f32 1.0, %v1267_v19  ;;  %v1224_v28 = vmul.f32 %v2236_v2, %v1223_v52  ;;  %v1260_v43 = vand.u32 2147483647, %v2225_v44  ;;  %vm1241_vm8 = vweird.f32 %v2216_v48 }
 0x2ef   :  { %v2242_v15 = vpop.eup %1602  ;;  %v1190_v63 = vadd.f32 1.0, %v1601_v39  ;;  %v1239_v33 = vmul.f32 %v2238_v5, %v1238_v22  ;;  %v1232_v18 = vand.u32 2147483648, %v2214_v56  ;;  %v1210_v6 = vadd.f32 %v2233_v8, %v2262_v23  ;;  %v1314_v23 = vld [vmem:[%s2396_s14 + $0x18] sm:$0xff] }
 0x2f0   :  { %v2244_v16 = vpop.eup %1604  ;;  %v1282_v51 = vmul.f32 %v2242_v15, %v2228_v59  ;;  %v1269_v27 = vmul.f32 %v2240_v0, %v1268_v54  ;;  %vm1287_vm4 = vweird.f32 %v2242_v15  ;;  %v1247_v59 = vand.u32 2147483648, %v2216_v48 }
 0x2f1   :  { %1606 = vrcp.f32 %v1190_v63  ;;  %v1252_v36 = vmul.f32 %v2244_v16, %v2225_v44  ;;  %v1307_v29 = vand.u32 2147483648, %v1190_v63  ;;  %v1305_v32 = vand.u32 2147483647, %v1190_v63  ;;  %vm2279_vm11 = vmor %vm1286_vm7, %vm1287_vm4 }
 0x2f2   :  { %v1283_v49 = vsub.f32 1.0, %v1282_v51  ;;  %vm1257_vm9 = vweird.f32 %v2244_v16  ;;  %vm1301_vm10 = vweird.f32 %v1190_v63  ;;  %v1270_v38 = vadd.f32 %v2240_v0, %v1269_v27 }
 0x2f3   :  { %v1253_v21 = vsub.f32 1.0, %v1252_v36  ;;  %v1308_v40 = vor.u32 1.1754944e-38, %v1307_v29  ;;  %vm1306_vm15 = vcmp.eq.f32.partialorder %v1305_v32, 8.507059e+37  ;;  %vm1256_vm4 = vweird.f32 %v2225_v44  ;;  %v1337_v29 = vpop.permute.xlu0 %1336 }
 0x2f4   :  { %v1284_v3 = vmul.f32 %v2242_v15, %v1283_v49  ;;  %v1274_v9 = vsel %vm2296_vm1, %v2240_v0, %v1270_v38  ;;  %v1240_v60 = vadd.f32 %v2238_v5, %v1239_v33  ;;  %vm2309_vm7 = vmor %vm1256_vm4, %vm1257_vm9  ;;  %v1245_v0 = vand.u32 2147483647, %v2216_v48 }
 0x2f5   :  { %v1254_v30 = vmul.f32 %v2244_v16, %v1253_v21  ;;  %v1225_v39 = vadd.f32 %v2236_v2, %v1224_v28  ;;  %vm2322_vm9 = vmor %vm1241_vm8, %vm1242_vm3  ;;  %v1248_v53 = vor.u32 1.1754944e-38, %v1247_v59  ;;  %vm1211_vm14 = vweird.f32 %v2212_v10 }
 0x2f6   :  { %v1285_v47 = vadd.f32 %v2242_v15, %v1284_v3  ;;  %v1244_v48 = vsel %vm2322_vm9, %v2238_v5, %v1240_v60  ;;  %v1217_v20 = vand.u32 2147483648, %v2212_v10  ;;  %v1215_v5 = vand.u32 2147483647, %v2212_v10 }
 0x2f7   :  { %v1607_v62 = vpop.eup %1606  ;;  %v1255_v41 = vadd.f32 %v2244_v16, %v1254_v30  ;;  %v1195_v49 = vadd.f32 %v2230_v14, %v2265_v24  ;;  %v1233_v58 = vor.u32 1.1754944e-38, %v1232_v18  ;;  %v1202_v54 = vand.u32 2147483648, %v2210_v55  ;;  %v1381_v24 = vld [vmem:[%s2397_s16] sm:$0xff] }
 0x2f8   :  { %v1297_v57 = vmul.f32 %v1607_v62, %v1190_v63  ;;  %vm1302_vm5 = vweird.f32 %v1607_v62  ;;  %v1289_v4 = vsel %vm2279_vm11, %v2242_v15, %v1285_v47  ;;  %v1263_v63 = vor.u32 1.1754944e-38, %v1262_v7  ;;  %1554 = vmatmul.msk.f32.vlgmr.msra.gmra.mxu2 %vm1093_vm2, %v1381_v24  ;;  %v1327_v47 = vpop.permute.xlu2 %1326 }
 0x2f9   :  { %vm1303_vm13 = vmor %vm1301_vm10, %vm1302_vm5  ;;  %vm1291_vm5 = vcmp.eq.f32.partialorder %v1290_v37, 8.507059e+37  ;;  %vm1276_vm10 = vcmp.eq.f32.partialorder %v1275_v12, 8.507059e+37  ;;  %v1259_v44 = vsel %vm2309_vm7, %v2244_v16, %v1255_v41  ;;  %vm1226_vm11 = vweird.f32 %v2214_v56  ;;  %v1382_v37 = vld [vmem:[%s2398_s17] sm:$0xff] }
 0x2fa   :  { %v1298_v25 = vsub.f32 1.0, %v1297_v57  ;;  %v1294_v11 = vsel %vm1291_vm5, %v1293_v46, %v1289_v4  ;;  %v1279_v15 = vsel %vm1276_vm10, %v1278_v31, %v1274_v9  ;;  %v1230_v16 = vand.u32 2147483647, %v2214_v56  ;;  %vm2336_vm3 = vmor %vm1226_vm11, %vm1227_vm6 }
 0x2fb   :  { %v1229_v56 = vsel %vm2336_vm3, %v2236_v2, %v1225_v39  ;;  %vm1213_vm6 = vmor %vm1211_vm14, %vm1212_vm12  ;;  %vm1196_vm4 = vweird.f32 %v2210_v55  ;;  %v1200_v2 = vand.u32 2147483647, %v2210_v55  ;;  %v1218_v10 = vor.u32 1.1754944e-38, %v1217_v20  ;;  %v1312_v55 = vld [vmem:[%s2396_s14 + $0x8] sm:$0xff] }
 0x2fc   :  { %v1299_v45 = vmul.f32 %v1607_v62, %v1298_v25  ;;  %vm1231_vm1 = vcmp.eq.f32.partialorder %v1230_v16, 8.507059e+37  ;;  %v1214_v52 = vsel %vm1213_vm6, %v2233_v8, %v1210_v6  ;;  %vm1198_vm5 = vmor %vm1196_vm4, %vm1197_vm0  ;;  %vm1216_vm7 = vcmp.eq.f32.partialorder %v1215_v5, 8.507059e+37  ;;  %v1311_v8 = vld [vmem:[%s2396_s14] sm:$0xff] }
 0x2fd   :  { %v1199_v21 = vsel %vm1198_vm5, %v2230_v14, %v1195_v49  ;;  %v1219_v22 = vsel %vm1216_vm7, %v1218_v10, %v1214_v52  ;;  %v1203_v57 = vor.u32 1.1754944e-38, %v1202_v54  ;;  %vm1201_vm12 = vcmp.eq.f32.partialorder %v1200_v2, 8.507059e+37  ;;  %v1313_v14 = vld [vmem:[%s2396_s14 + $0x10] sm:$0xff] }
 0x2fe   :  { %v1300_v34 = vadd.f32 %v1607_v62, %v1299_v45  ;;  %vm1339_vm8 = vcmask 523264   ;;  %v1332_v45 = vpop.permute.xlu1 %1331 }
 0x2ff   :  { %v1204_v3 = vsel %vm1201_vm12, %v1203_v57, %v1199_v21 }
 0x300   :  { %v1304_v1 = vsel %vm1303_vm13, %v1607_v62, %v1300_v34  ;;  %vm1261_vm13 = vcmp.eq.f32.partialorder %v1260_v43, 8.507059e+37  ;;  %v1234_v62 = vsel %vm1231_vm1, %v1233_v58, %v1229_v56  ;;  %v1322_v34 = vpop.permute.xlu0 %1321 }
 0x301   :  { %v1309_v42 = vsel %vm1306_vm15, %v1308_v40, %v1304_v1  ;;  %v1264_v19 = vsel %vm1261_vm13, %v1263_v63, %v1259_v44  ;;  %vm1246_vm15 = vcmp.eq.f32.partialorder %v1245_v0, 8.507059e+37 }
 0x302   :  { %1360 = vmatpush.msrb.mxu0 %v1309_v42  ;;  %v1249_v50 = vsel %vm1246_vm15, %v1248_v53, %v1244_v48 }
 0x304   :  { %1361 = vmatpush.msrb.mxu0 %v1294_v11 }
 0x306   :  { %1362 = vmatpush.msrb.mxu0 %v1279_v15  ;;  %v1433_v17 = vpop.permute.xlu1 %1432 }
 0x308   :  { %1363 = vmatpush.msrb.mxu0 %v1264_v19 }
 0x30a   :  { %1364 = vmatpush.msrb.mxu0 %v1249_v50 }
 0x30c   :  { %1365 = vmatpush.msrb.mxu0 %v1234_v62 }
 0x30e   :  { %1366 = vmatpush.msrb.mxu0 %v1219_v22 }
 0x310   :  { %1367 = vmatpush.msrb.mxu0 %v1204_v3 }
 0x311   :  { %1549 = vmatmul.msk.f32.vlgmr.msrb.gmra.mxu0 %vm1339_vm8, %v1311_v8 }
 0x319   :  { %1550 = vmatmul.msk.f32.gmra.mxu0 %vm1339_vm8, %v1312_v55 }
 0x321   :  { %1551 = vmatmul.msk.f32.gmra.mxu0 %vm1339_vm8, %v1313_v14 }
 0x329   :  { %1552 = vmatmul.msk.f32.gmra.mxu0 %vm1339_vm8, %v1314_v23 }
 0x37b   :  { %v1426_v38 = vpop.f32.mrf.mxu2 }
 0x38e   :  { %v1369_v25 = vpop.f32.mrf.mxu0 }
 0x38f   :  { %v1370_v35 = vadd.f32 %v1369_v25, %v1322_v34 }
 0x396   :  { %v1372_v27 = vpop.f32.mrf.mxu0 }
 0x397   :  { %v1373_v26 = vadd.f32 %v1372_v27, %v1327_v47 }
 0x39e   :  { %v1375_v28 = vpop.f32.mrf.mxu0 }
 0x39f   :  { %v1376_v32 = vadd.f32 %v1375_v28, %v1332_v45 }
 0x3a6   :  { %v1378_v30 = vpop.f32.mrf.mxu0 }
 0x3a7   :  { %v1379_v33 = vadd.f32 %v1378_v30, %v1337_v29 }
 0x3a9   :  { %1398 = vmatpush.msra.mxu1 %v1379_v33 }
 0x3ab   :  { %1399 = vmatpush.msra.mxu1 %v1376_v32 }
 0x3ad   :  { %1400 = vmatpush.msra.mxu1 %v1373_v26 }
 0x3af   :  { %1401 = vmatpush.msra.mxu1 %v1370_v35 }
 0x3b0   :  { %1553 = vmatmul.msk.f32.vlgmr.msra.gmra.mxu1 %vm1093_vm2, %v1382_v37 }
 0x42d   :  { %v1403_v40 = vpop.f32.mrf.mxu1 }
 0x42e   :  { %v1427_v12 = vadd.f32 %v1426_v38, %v1403_v40 }
 0x430   :  { %v1435_v1 = vadd.f32 %v1433_v17, %v1427_v12 }
 0x432   :  { %1436 = vst [vmem:[%s2399_s19] sm:$0xff] %v1435_v1 }

</bundles_post_ra>
